<compile_context>
chip_gen: v7x
topology: tpu7x:2x2x1
jax: 0.10.0
libtpu: 0.0.40
codegen_flags: <defaults>
</compile_context>

<pallas_src>
import functools
import math

import jax
import jax.numpy as jnp
from jax import lax
from jax.experimental import pallas as pl
from jax.experimental.pallas import tpu as pltpu


VMEM_LIMIT = 32 * 1024 * 1024  # safe on v5e/v6e/v7x; tiles below are ~1-2 MiB


def _tile(dim, pref):
    """Largest power-of-two-ish tile <= pref that divides dim (or dim itself)."""
    if dim <= pref:
        return dim
    t = pref
    while dim % t != 0:
        t //= 2
    return max(t, 1)


# ------------------------------ LayerNorm ------------------------------ #
def _layernorm_kernel(x_ref, g_ref, b_ref, o_ref, *, eps):
    x = x_ref[...].astype(jnp.float32)
    mean = jnp.mean(x, axis=-1, keepdims=True)
    xc = x - mean
    var = jnp.mean(xc * xc, axis=-1, keepdims=True)
    y = xc * lax.rsqrt(var + eps)
    o_ref[...] = (y * g_ref[...].astype(jnp.float32)
                  + b_ref[...].astype(jnp.float32)).astype(o_ref.dtype)


def layernorm(x, gamma, beta, eps=1e-5, out_dtype=jnp.bfloat16, block_t=128):
    T, H = x.shape
    bt = _tile(T, block_t)
    return pl.pallas_call(
        functools.partial(_layernorm_kernel, eps=eps),
        out_shape=jax.ShapeDtypeStruct((T, H), out_dtype),
        grid=(T // bt,),
        in_specs=[
            pl.BlockSpec((bt, H), lambda i: (i, 0)),
            pl.BlockSpec((1, H), lambda i: (0, 0)),
            pl.BlockSpec((1, H), lambda i: (0, 0)),
        ],
        out_specs=pl.BlockSpec((bt, H), lambda i: (i, 0)),
        compiler_params=pltpu.CompilerParams(
            dimension_semantics=("parallel",),
            vmem_limit_bytes=VMEM_LIMIT),
    )(x, gamma.reshape(1, H), beta.reshape(1, H))


# ---------------- Fused QKV projection (head-major outputs) ---------------- #
def _qkv_kernel(h_ref, wq_ref, wk_ref, wv_ref, q_ref, k_ref, v_ref,
                qacc, kacc, vacc):
    kstep = pl.program_id(2)

    @pl.when(kstep == 0)
    def _():
        qacc[...] = jnp.zeros_like(qacc)
        kacc[...] = jnp.zeros_like(kacc)
        vacc[...] = jnp.zeros_like(vacc)

    h = h_ref[...]
    qacc[...] += jnp.dot(h, wq_ref[0], preferred_element_type=jnp.float32)
    kacc[...] += jnp.dot(h, wk_ref[0], preferred_element_type=jnp.float32)
    vacc[...] += jnp.dot(h, wv_ref[0], preferred_element_type=jnp.float32)

    @pl.when(kstep == pl.num_programs(2) - 1)
    def _():
        q_ref[0] = qacc[...].astype(q_ref.dtype)
        k_ref[0] = kacc[...].astype(k_ref.dtype)
        v_ref[0] = vacc[...].astype(v_ref.dtype)


def qkv_proj_heads(h, wq, wk, wv, block_m=128, block_k=512):
    # h: [T, H] bf16; wq/wk/wv: [NH, H, D] bf16  ->  q/k/v: [NH, T, D] bf16
    T, H = h.shape
    NH, _, D = wq.shape
    tm = _tile(T, block_m)
    tk = _tile(H, block_k)
    hspec = pl.BlockSpec((tm, tk), lambda i, hh, k: (i, k))
    wspec = pl.BlockSpec((1, tk, D), lambda i, hh, k: (hh, k, 0))
    ospec = pl.BlockSpec((1, tm, D), lambda i, hh, k: (hh, i, 0))
    out_sds = jax.ShapeDtypeStruct((NH, T, D), h.dtype)
    return pl.pallas_call(
        _qkv_kernel,
        out_shape=(out_sds, out_sds, out_sds),
        grid=(T // tm, NH, H // tk),
        in_specs=[hspec, wspec, wspec, wspec],
        out_specs=(ospec, ospec, ospec),
        scratch_shapes=[pltpu.VMEM((tm, D), jnp.float32)] * 3,
        compiler_params=pltpu.CompilerParams(
            dimension_semantics=("parallel", "parallel", "arbitrary"),
            vmem_limit_bytes=VMEM_LIMIT),
    )(h, wq, wk, wv)


# ----------------------- Flash-style causal attention ----------------------- #
def _flash_attn_kernel(q_ref, k_ref, v_ref, o_ref, m_sc, l_sc, acc_sc,
                       *, scale, tq, tkv):
    qi = pl.program_id(1)
    ki = pl.program_id(2)

    # last kv tile with any unmasked entry for this q tile (causal)
    last_k = (qi * tq + tq - 1) // tkv

    @pl.when(ki == 0)
    def _():
        m_sc[...] = jnp.full_like(m_sc, -jnp.inf)
        l_sc[...] = jnp.zeros_like(l_sc)
        acc_sc[...] = jnp.zeros_like(acc_sc)

    @pl.when(ki <= last_k)
    def _():
        q = q_ref[0]
        k = k_ref[0]
        v = v_ref[0]
        s = lax.dot_general(q, k, (((1,), (1,)), ((), ())),
                            preferred_element_type=jnp.float32) * scale  # [tq,tkv]
        row = qi * tq + lax.broadcasted_iota(jnp.int32, (tq, tkv), 0)
        col = ki * tkv + lax.broadcasted_iota(jnp.int32, (tq, tkv), 1)
        s = jnp.where(col <= row, s, -jnp.inf)

        m_prev = m_sc[...]
        m_new = jnp.maximum(m_prev, jnp.max(s, axis=-1, keepdims=True))
        alpha = jnp.exp(m_prev - m_new)
        p = jnp.exp(s - m_new)
        l_sc[...] = alpha * l_sc[...] + jnp.sum(p, axis=-1, keepdims=True)
        acc_sc[...] = alpha * acc_sc[...] + jnp.dot(
            p.astype(v.dtype), v, preferred_element_type=jnp.float32)
        m_sc[...] = m_new

    @pl.when(ki == last_k)
    def _():
        o_ref[0] = (acc_sc[...] * pl.reciprocal(l_sc[...], approx=True)
                    ).astype(o_ref.dtype)


def flash_causal_attention(q, k, v, scale, block_q=128, block_kv=128):
    # q, k, v: [NH, T, D] (head-major)
    NH, T, D = q.shape
    tq = _tile(T, block_q)
    tkv = _tile(T, block_kv)
    q_spec = pl.BlockSpec((1, tq, D), lambda h, qi, ki: (h, qi, 0))
    kv_spec = pl.BlockSpec((1, tkv, D), lambda h, qi, ki: (h, ki, 0))
    return pl.pallas_call(
        functools.partial(_flash_attn_kernel, scale=scale, tq=tq, tkv=tkv),
        out_shape=jax.ShapeDtypeStruct((NH, T, D), q.dtype),
        grid=(NH, T // tq, T // tkv),
        in_specs=[q_spec, kv_spec, kv_spec],
        out_specs=pl.BlockSpec((1, tq, D), lambda h, qi, ki: (h, qi, 0)),
        scratch_shapes=[
            pltpu.VMEM((tq, 1), jnp.float32),
            pltpu.VMEM((tq, 1), jnp.float32),
            pltpu.VMEM((tq, D), jnp.float32),
        ],
        compiler_params=pltpu.CompilerParams(
            dimension_semantics=("parallel", "parallel", "arbitrary"),
            vmem_limit_bytes=VMEM_LIMIT),
    )(q, k, v)


# -------------- out_proj over head-major input, + residual fused -------------- #
def _out_proj_kernel(a_ref, w_ref, res_ref, o_ref, acc_ref):
    h = pl.program_id(2)

    @pl.when(h == 0)
    def _():
        acc_ref[...] = jnp.zeros_like(acc_ref)

    acc_ref[...] += jnp.dot(a_ref[0], w_ref[0],
                            preferred_element_type=jnp.float32)

    @pl.when(h == pl.num_programs(2) - 1)
    def _():
        o_ref[...] = (acc_ref[...]
                      + res_ref[...].astype(jnp.float32)).astype(o_ref.dtype)


def out_proj_residual(attn, w_out_heads, residual, block_m=128, block_n=256):
    # attn: [NH, T, D] bf16; w_out_heads: [NH, D, H] bf16; residual: [T, H] f32
    NH, T, D = attn.shape
    H = w_out_heads.shape[-1]
    tm = _tile(T, block_m)
    tn = _tile(H, block_n)
    return pl.pallas_call(
        _out_proj_kernel,
        out_shape=jax.ShapeDtypeStruct((T, H), residual.dtype),
        grid=(T // tm, H // tn, NH),
        in_specs=[
            pl.BlockSpec((1, tm, D), lambda i, j, h: (h, i, 0)),
            pl.BlockSpec((1, D, tn), lambda i, j, h: (h, 0, j)),
            pl.BlockSpec((tm, tn), lambda i, j, h: (i, j)),
        ],
        out_specs=pl.BlockSpec((tm, tn), lambda i, j, h: (i, j)),
        scratch_shapes=[pltpu.VMEM((tm, tn), jnp.float32)],
        compiler_params=pltpu.CompilerParams(
            dimension_semantics=("parallel", "parallel", "arbitrary"),
            vmem_limit_bytes=VMEM_LIMIT),
    )(attn, w_out_heads, residual)


# ---------- Generic tiled matmul (+bias, +gelu_new, +residual epilogue) ---------- #
def _matmul_kernel(*refs, act=None, has_bias=False, has_res=False):
    x_ref, w_ref = refs[0], refs[1]
    idx = 2
    b_ref = None
    res_ref = None
    if has_bias:
        b_ref = refs[idx]
        idx += 1
    if has_res:
        res_ref = refs[idx]
        idx += 1
    o_ref = refs[idx]
    acc_ref = refs[idx + 1]

    k = pl.program_id(2)

    @pl.when(k == 0)
    def _():
        acc_ref[...] = jnp.zeros_like(acc_ref)

    acc_ref[...] += jnp.dot(x_ref[...], w_ref[...],
                            preferred_element_type=jnp.float32)

    @pl.when(k == pl.num_programs(2) - 1)
    def _():
        y = acc_ref[...]
        if has_bias:
            y = y + b_ref[...].astype(jnp.float32)
        if act == "gelu_new":
            # GPT-J "gelu_new" (tanh approximation), in f32 on the VPU/EUP
            c = math.sqrt(2.0 / math.pi)
            y = 0.5 * y * (1.0 + jnp.tanh(c * (y + 0.044715 * y * y * y)))
        if has_res:
            y = y + res_ref[...].astype(jnp.float32)
        o_ref[...] = y.astype(o_ref.dtype)


def tiled_linear(x, w, bias=None, residual=None, act=None, out_dtype=None,
                 block_m=128, block_n=256, block_k=512):
    T, K = x.shape
    K2, N = w.shape
    assert K == K2
    tm = _tile(T, block_m)
    tn = _tile(N, block_n)
    tk = _tile(K, block_k)
    out_dtype = out_dtype or x.dtype

    in_specs = [
        pl.BlockSpec((tm, tk), lambda i, j, k: (i, k)),
        pl.BlockSpec((tk, tn), lambda i, j, k: (k, j)),
    ]
    inputs = [x, w]
    if bias is not None:
        in_specs.append(pl.BlockSpec((1, tn), lambda i, j, k: (0, j)))
        inputs.append(bias.reshape(1, N).astype(jnp.float32))
    if residual is not None:
        in_specs.append(pl.BlockSpec((tm, tn), lambda i, j, k: (i, j)))
        inputs.append(residual)

    return pl.pallas_call(
        functools.partial(_matmul_kernel, act=act,
                          has_bias=bias is not None,
                          has_res=residual is not None),
        out_shape=jax.ShapeDtypeStruct((T, N), out_dtype),
        grid=(T // tm, N // tn, K // tk),
        in_specs=in_specs,
        out_specs=pl.BlockSpec((tm, tn), lambda i, j, k: (i, j)),
        scratch_shapes=[pltpu.VMEM((tm, tn), jnp.float32)],
        compiler_params=pltpu.CompilerParams(
            dimension_semantics=("parallel", "parallel", "arbitrary"),
            vmem_limit_bytes=VMEM_LIMIT),
    )(*inputs)


# ------------------------ GPT-J interleaved rotary ------------------------ #
def gptj_rotary(x, positions, rotary_dim, base=10000.0):
    # x: [NH, T, D]; GPT-J style (rotate_every_two, interleaved), math in f32.
    # TODO(synk): could be fused into the qkv-projection / attention kernel
    # epilogue to save one q/k HBM round-trip; kept as cheap elementwise glue.
    inv_freq = 1.0 / (
        base ** (jnp.arange(0, rotary_dim, 2, dtype=jnp.float32) / rotary_dim))
    sinusoid = positions.astype(jnp.float32)[:, None] * inv_freq[None, :]
    sin = jnp.repeat(jnp.sin(sinusoid), 2, axis=-1)[None, :, :]  # [1, T, rot]
    cos = jnp.repeat(jnp.cos(sinusoid), 2, axis=-1)[None, :, :]
    x_rot = x[..., :rotary_dim].astype(jnp.float32)
    x_pass = x[..., rotary_dim:]
    x1 = x_rot[..., ::2]
    x2 = x_rot[..., 1::2]
    rot = jnp.stack([-x2, x1], axis=-1).reshape(x_rot.shape)
    x_rot = x_rot * cos + rot * sin
    return jnp.concatenate([x_rot.astype(x.dtype), x_pass], axis=-1)


# ------------------------------ GPT-J block ------------------------------ #
def gptj_block(position_ids, hidden_states, kv_cache, params, num_heads,
               rotary_dim, eps=1e-5):
    T, H = hidden_states.shape
    D = H // num_heads
    residual = hidden_states  # f32

    # One-time weight prep: bf16 MXU operands, head-major layouts (in real
    # serving this is done once at weight-load time, not per forward).
    wq, wk, wv = jnp.split(params["w_qkv"].astype(jnp.bfloat16), 3, axis=-1)
    wq = wq.reshape(H, num_heads, D).transpose(1, 0, 2)      # [NH, H, D]
    wk = wk.reshape(H, num_heads, D).transpose(1, 0, 2)
    wv = wv.reshape(H, num_heads, D).transpose(1, 0, 2)
    w_out = params["w_out"].astype(jnp.bfloat16).reshape(num_heads, D, H)
    w_fc_in = params["w_fc_in"].astype(jnp.bfloat16)
    w_fc_out = params["w_fc_out"].astype(jnp.bfloat16)

    # LayerNorm (f32 statistics, bf16 activation output for the MXU consumers)
    h = layernorm(hidden_states, params["ln_g"], params["ln_b"], eps)

    # Fused QKV projection -> head-major [NH, T, D] (no bias)
    q, k, v = qkv_proj_heads(h, wq, wk, wv)

    # GPT-J interleaved rotary on q, k
    q = gptj_rotary(q, position_ids, rotary_dim)
    k = gptj_rotary(k, position_ids, rotary_dim)

    # TODO(synk): vLLM's paged KV-cache read/write (InputMetadata, cache_event)
    # is not replicated; this computes prompt-phase causal attention only.
    scale = D ** (-0.5)
    attn = flash_causal_attention(q, k, v, scale)            # [NH, T, D] bf16

    # out_proj (no bias) with residual add fused into the epilogue -> f32 [T, H]
    attn_res = out_proj_residual(attn, w_out, residual)

    # MLP: fc_in with bias + gelu_new fused; fc_out with bias + (attn+residual) fused
    inner = tiled_linear(h, w_fc_in, bias=params["b_fc_in"], act="gelu_new",
                         out_dtype=jnp.bfloat16)
    out = tiled_linear(inner, w_fc_out, bias=params["b_fc_out"],
                       residual=attn_res, out_dtype=hidden_states.dtype)
    return out


# ---------------------------------- main ---------------------------------- #
if __name__ == "__main__":
    # Small but TPU-tile-friendly shapes (lane dims multiples of 128).
    T = 256            # num tokens (single causal sequence)
    H = 512            # n_embd
    NUM_HEADS = 4
    HEAD_SIZE = H // NUM_HEADS   # 128
    ROTARY_DIM = 32    # even, <= head_size
    INNER = 4 * H      # n_inner is None -> 4 * n_embd

    key = jax.random.PRNGKey(0)
    ks = jax.random.split(key, 10)

    hidden_states = jax.random.normal(ks[0], (T, H), jnp.float32)
    position_ids = jnp.arange(T, dtype=jnp.int32)

    params = {
        "ln_g": 1.0 + 0.01 * jax.random.normal(ks[1], (H,), jnp.float32),
        "ln_b": 0.01 * jax.random.normal(ks[2], (H,), jnp.float32),
        "w_qkv": 0.05 * jax.random.normal(ks[3], (H, 3 * H), jnp.float32),
        "w_out": 0.05 * jax.random.normal(ks[4], (H, H), jnp.float32),
        "w_fc_in": 0.05 * jax.random.normal(ks[5], (H, INNER), jnp.float32),
        "b_fc_in": 0.01 * jax.random.normal(ks[6], (INNER,), jnp.float32),
        "w_fc_out": 0.05 * jax.random.normal(ks[7], (INNER, H), jnp.float32),
        "b_fc_out": 0.01 * jax.random.normal(ks[8], (H,), jnp.float32),
    }

    # dummy KV cache (unused; prompt-phase only — see TODO above)
    kv_cache = (
        jnp.zeros((NUM_HEADS, T, HEAD_SIZE), jnp.float32),
        jnp.zeros((NUM_HEADS, T, HEAD_SIZE), jnp.float32),
    )

    out = gptj_block(position_ids, hidden_states, kv_cache, params,
                     NUM_HEADS, ROTARY_DIM)
    jax.block_until_ready(out)
    assert out.shape == (T, H)
    assert bool(jnp.all(jnp.isfinite(out)))
    print("KERNEL_OK")
</pallas_src>

<mosaic_0001>
module attributes {stable_mosaic.version = 11 : i64} {
  func.func @_layernorm_kernel(%arg0: i32, %arg1: memref<128x512xf32, #tpu.memory_space<vmem>>, %arg2: memref<1x512xf32, #tpu.memory_space<vmem>>, %arg3: memref<1x512xf32, #tpu.memory_space<vmem>>, %arg4: memref<128x512xbf16, #tpu.memory_space<vmem>>) attributes {dimension_semantics = [#tpu.dimension_semantics<parallel>], iteration_bounds = array<i64: 2>, scalar_prefetch = 0 : i64, scratch_operands = 0 : i64, tpu.core_type = #tpu.core_type<tc>, window_params = [{transform_indices = @transform_0, window_bounds = array<i64: 128, 512>}, {pipeline_mode = #tpu.pipeline_mode<synchronous>, transform_indices = @transform_1, window_bounds = array<i64: 1, 512>}, {pipeline_mode = #tpu.pipeline_mode<synchronous>, transform_indices = @transform_2, window_bounds = array<i64: 1, 512>}, {transform_indices = @transform_3, window_bounds = array<i64: 128, 512>}]} {
    %c0 = arith.constant 0 : index
    %c0_0 = arith.constant 0 : index
    %0 = vector.load %arg1[%c0, %c0_0] : memref<128x512xf32, #tpu.memory_space<vmem>>, vector<128x512xf32>
    %cst = arith.constant dense<0.000000e+00> : vector<128xf32>
    %1 = vector.multi_reduction <add>, %0, %cst [1] : vector<128x512xf32> to vector<128xf32>
    %2 = vector.shape_cast %1 : vector<128xf32> to vector<128x1xf32>
    %cst_1 = arith.constant 5.120000e+02 : f32
    %3 = vector.broadcast %cst_1 : f32 to vector<128x1xf32>
    %4 = arith.divf %2, %3 : vector<128x1xf32>
    %5 = vector.broadcast %4 : vector<128x1xf32> to vector<128x512xf32>
    %6 = arith.subf %0, %5 : vector<128x512xf32>
    %7 = arith.mulf %6, %6 : vector<128x512xf32>
    %cst_2 = arith.constant dense<0.000000e+00> : vector<128xf32>
    %8 = vector.multi_reduction <add>, %7, %cst_2 [1] : vector<128x512xf32> to vector<128xf32>
    %9 = vector.shape_cast %8 : vector<128xf32> to vector<128x1xf32>
    %cst_3 = arith.constant 5.120000e+02 : f32
    %10 = vector.broadcast %cst_3 : f32 to vector<128x1xf32>
    %11 = arith.divf %9, %10 : vector<128x1xf32>
    %cst_4 = arith.constant 9.99999974E-6 : f32
    %12 = vector.broadcast %cst_4 : f32 to vector<128x1xf32>
    %13 = arith.addf %11, %12 : vector<128x1xf32>
    %14 = math.rsqrt %13 : vector<128x1xf32>
    %15 = vector.broadcast %14 : vector<128x1xf32> to vector<128x512xf32>
    %16 = arith.mulf %6, %15 : vector<128x512xf32>
    %c0_5 = arith.constant 0 : index
    %c0_6 = arith.constant 0 : index
    %17 = vector.load %arg2[%c0_5, %c0_6] : memref<1x512xf32, #tpu.memory_space<vmem>>, vector<1x512xf32>
    %18 = vector.broadcast %17 : vector<1x512xf32> to vector<128x512xf32>
    %19 = arith.mulf %16, %18 : vector<128x512xf32>
    %c0_7 = arith.constant 0 : index
    %c0_8 = arith.constant 0 : index
    %20 = vector.load %arg3[%c0_7, %c0_8] : memref<1x512xf32, #tpu.memory_space<vmem>>, vector<1x512xf32>
    %21 = vector.broadcast %20 : vector<1x512xf32> to vector<128x512xf32>
    %22 = arith.addf %19, %21 : vector<128x512xf32>
    %23 = arith.truncf %22 : vector<128x512xf32> to vector<128x512xbf16>
    %c0_9 = arith.constant 0 : index
    %c0_10 = arith.constant 0 : index
    %24 = vector.load %arg4[%c0_9, %c0_10] : memref<128x512xbf16, #tpu.memory_space<vmem>>, vector<128x512xbf16>
    tpu.vector_store %arg4[%c0_9, %c0_10], %23 {strides = array<i32>} : memref<128x512xbf16, #tpu.memory_space<vmem>>, vector<128x512xbf16>,
    return
  }
  func.func @transform_0(%arg0: i32) -> (i32, i32) {
    %c0_i32 = arith.constant 0 : i32
    %c0_i32_0 = arith.constant 0 : i32
    return %arg0, %c0_i32 : i32, i32
  }
  func.func @transform_1(%arg0: i32) -> (i32, i32) {
    %c0_i32 = arith.constant 0 : i32
    %c0_i32_0 = arith.constant 0 : i32
    %c0_i32_1 = arith.constant 0 : i32
    return %c0_i32, %c0_i32_0 : i32, i32
  }
  func.func @transform_2(%arg0: i32) -> (i32, i32) {
    %c0_i32 = arith.constant 0 : i32
    %c0_i32_0 = arith.constant 0 : i32
    %c0_i32_1 = arith.constant 0 : i32
    return %c0_i32, %c0_i32_0 : i32, i32
  }
  func.func @transform_3(%arg0: i32) -> (i32, i32) {
    %c0_i32 = arith.constant 0 : i32
    %c0_i32_0 = arith.constant 0 : i32
    return %arg0, %c0_i32 : i32, i32
  }
}

</mosaic_0001>

<bundles_post_ra>
// kernel: tpu_custom_call.1
= control target key start
LH: loop header
LB: loop body
LE: loop exit
PB: predicated region body
PF: predicated region fallthrough
CT: control target
= control target key end

     0   :  { %8 = vsyncpa [#allocation3], 0  ;;  %s2617_s0 = inlined_call_operand.hbm [shape: f32[256,512], index: 0, kind: input, shape index: {}]   ;;  %s2618_s1 = inlined_call_operand.hbm [shape: f32[1,512], index: 1, kind: input, shape index: {}]   ;;  %s2619_s2 = inlined_call_operand.vmem [shape: f32[1,512], index: 2, kind: input, shape index: {}]   ;;  %s2620_s3 = inlined_call_operand.hbm [shape: bf16[256,512], index: 3, kind: output, shape index: {}]  }
   0x1   :  { %10 = vsyncpa [#allocation3 + $0x1], 0 }
   0x2   :  { %11 = vsyncpa [#allocation6], 0 }
   0x3   :  { %12 = vsyncpa [#allocation4], 0 }
   0x4   :  { %14 = vsyncpa [#allocation4 + $0x1], 0  ;;  %s1516_s12 = smov 0   ;;  %s1518_s13 = smov 0  }
   0x5   :  { %s1520_s14 = smov 0   ;;  %s1522_s15 = smov 0  }
   0x6 LB: > { %s1537_s16 = sadd.s32 4294967295, %s1487_s15   ;;  %s1180_s17 = sadd.s32 4294967294, %s1487_s15   ;;  %s1487_s15 = sphi %s1522_s15, %s2777_s15   ;;  %s1483_s14 = sphi %s1520_s14, %s2776_s14   ;;  %s1479_s13 = sphi %s1518_s13, %s2775_s13   ;;  %s1475_s12 = sphi %s1516_s12, %s2774_s12  }
   0x7   : > { %s1541_s18 = sadd.s32 1, %s1487_s15   ;;  %s27_s19 = sadd.s32 1, %s1483_s14 }
   0x8   : > { %s24_s20 = ssub.s32 %s1487_s15, %s1541_s18  ;;  %p34_p0 = scmp.ne.s32.totalorder %s1483_s14, %s1479_s13 }
   0x9   : > { %p25_p1 = scmp.eq.s32.totalorder %s24_s20, 0  ;;  %p35_p2 = scmp.eq.s32.totalorder %s1487_s15, 0 }
   0xa   : > { %p40_p3 = scmp.ne.s32.totalorder %s1479_s13, %s1475_s12  ;;  %p2621_p4 = scmp.eq.s32.totalorder %s1537_s16, 0 }
   0xb   : > { %s1553_s21 = scalar_select %p25_p1, %s1483_s14, %s27_s19  }
   0xc   : > { %p1555_p5 = por %p35_p2, %p34_p0  ;;  %p1561_p6 = por %p2621_p4, %p40_p3 }
   0xd   : > { %p106_p7 = scmp.eq.s32.totalorder %s1537_s16, 1  ;;  %p112_p8 = scmp.eq.s32.totalorder %s1180_s17, 1 }
   0xe   : > { %s2671_s23 = scalar_select %p1561_p6, 1, 0 }
   0xf   : > { %p1181_p9 = scmp.ge.s32.totalorder %s1487_s15, 1  ;;  %p119_p10 = scmp.lt.s32.totalorder %s1487_s15, 3 }
  0x10   : > { %p1568_p11 = por %p106_p7, %p34_p0  ;;  %p1572_p12 = por %p112_p8, %p40_p3 }
  0x11   : > { %p1576_p13 = pnand %p1181_p9, %p119_p10  ;;  %s1489_s27 = smov [#allocation5]  }
  0x12   : > { %s2672_s24 = scalar_select %p1568_p11, 1, 0 }
  0x13   : > { %s2673_s25 = scalar_select %p1572_p12, 1, 0 }
  0x14   : > { %s2674_s26 = scalar_select %p1576_p13, 1, 0 }
  0x15   : > { %p1274_p2 = pneg %p1576_p13  ;;  %s132_s28 = sshll.u32 %s1489_s27, 4  ;;  %s133_s28 = int_to_ptr.vmem [resolvable:$true] %s132_s28 }
  0x16   : > { %p1287_p4 = scmp.lt.s32.totalorder %s1487_s15, 2  ;;  %p2675_p0 = scmp.eq.s32.totalorder %s1537_s16, 0 }
  0x17   : > { %s146_s30 = sand.u32 1, %s1483_s14   ;;  %s1359_s8 = scalar_lea.hbm %s2618_s1, 64 }
  0x18   : > { %p1586_p7 = pnand %p1274_p2, %p2675_p0  ;;  %p1593_p3 = pnand %p1287_p4, %p1555_p5 }
  0x19   : > { %s1184_s5 = sshll.u32 %s146_s30, 9  ;;  %p1360_p8 = scmp.ne.s32.totalorder %s2618_s1, %s1359_s8 }
  0x1a   : > { %s2677_s4 = scalar_select %p1593_p3, 1, 0 }
  0x1b   : > { %p1361_p9 = pneg %p1586_p7  ;;  %p1366_p4 = scmp.lt.u32.totalorder %s1359_s8, %s2618_s1 }
  0x1d   : > { %p1362_p10 = pnand %p1361_p9, %p1360_p8 }
  0x1f   : > { %p1363_p2 = pneg %p1362_p10 }
  0x21   : > { %p1368_p5 = pnand %p1366_p4, %p1363_p2 }
  0x23   : > { %1371 = shalt.err (!%p1368_p5)
}
  0x24   : > { %s1372_s19 = scalar_lea.vmem %s133_s28, 64  ;;  %p1380_p11 = scmp.lt.s32.totalorder %s133_s28, %s133_s28 }
  0x25   : > { %p1373_p0 = scmp.ne.s32.totalorder %s133_s28, %s1372_s19  ;;  %p1381_p6 = scmp.lt.s32.totalorder %s1372_s19, %s1372_s19 }
  0x27   : > { %p1375_p1 = pnand %p1373_p0, %p1361_p9  ;;  %p1382_p13 = por %p1381_p6, %p1380_p11 }
  0x29   : > { %p1376_p12 = pneg %p1375_p1 }
  0x2b   : > { %p1383_p3 = pnand %p1382_p13, %p1376_p12 }
  0x2d   : > { %1386 = shalt.err (!%p1383_p3)
}
  0x2e   : > { %1277 = dma.hbm_to_vmem [thread:$0]  (!%p1586_p7), %s2618_s1, 64, %s133_s28, [#allocation6]  }
  0x2f   : > { %s1231_s27 = sshll.u32 %s1487_s15, 13  ;;  %s150_s6 = scalar_lea.vmem [#allocation2], %s1184_s5 }
  0x30   : > { %s158_s7 = sshll.u32 %s150_s6, 4  ;;  %s1617_s10 = scalar_lea.hbm %s2617_s0, %s1231_s27  ;;  %s1619_s7 = int_to_ptr.vmem [resolvable:$true] %s158_s7 }
  0x31   : > { %s1621_s29 = scalar_lea.sflag [#allocation3], %s146_s30  ;;  %s1387_s11 = scalar_lea.hbm %s1617_s10, 8192 }
  0x32   : > { %p1388_p6 = scmp.ne.s32.totalorder %s1617_s10, %s1387_s11  ;;  %p2678_p11 = scmp.ne.s32.totalorder %s2677_s4, 0 }
  0x33   : > { %s1392_s17 = scalar_lea.hbm %s2617_s0, 16384  ;;  %p1393_p7 = scmp.lt.u32.totalorder %s1617_s10, %s2617_s0 }
  0x34   : > { %p1389_p12 = pneg %p2678_p11  ;;  %p1394_p3 = scmp.lt.u32.totalorder %s1392_s17, %s1387_s11 }
  0x35   : > { %p1396_p9 = scmp.lt.u32.totalorder %s1387_s11, %s1617_s10 }
  0x36   : > { %p1390_p13 = pnand %p1389_p12, %p1388_p6  ;;  %p1395_p8 = por %p1394_p3, %p1393_p7 }
  0x38   : > { %p1391_p1 = pneg %p1390_p13  ;;  %p1397_p10 = por %p1396_p9, %p1395_p8 }
  0x3a   : > { %p1398_p2 = pnand %p1397_p10, %p1391_p1 }
  0x3c   : > { %1401 = shalt.err (!%p1398_p2)
}
  0x3d   : > { %s1402_s30 = scalar_lea.vmem %s1619_s7, 8192  ;;  %s1490_s22 = smov [#allocation2]  }
  0x3e   : > { %p1403_p4 = scmp.ne.s32.totalorder %s1619_s7, %s1402_s30  ;;  %s1407_s27 = sshll.u32 %s1490_s22, 4  ;;  %s1408_s27 = int_to_ptr.vmem [resolvable:$false] %s1407_s27 }
  0x3f   : > { %s1409_s6 = scalar_lea.vmem %s1408_s27, 16384  ;;  %p1410_p6 = scmp.lt.s32.totalorder %s1619_s7, %s1408_s27 }
  0x40   : > { %p1405_p5 = pnand %p1403_p4, %p1389_p12  ;;  %p1411_p13 = scmp.lt.s32.totalorder %s1409_s6, %s1402_s30 }
  0x42   : > { %p1406_p0 = pneg %p1405_p5  ;;  %p1412_p7 = por %p1411_p13, %p1410_p6 }
  0x44   : > { %p1413_p3 = pnand %p1412_p7, %p1406_p0 }
  0x46   : > { %1416 = shalt.err (!%p1413_p3)
}
  0x47   : > { %s1491_s8 = smov 512   ;;  %s1492_s9 = smov 32  }
  0x48   : > { %1281 = dma.hbm_to_vmem [thread:$0]  (!%p2678_p11), %s1617_s10, 8192, %s1619_s7, %s1621_s29, %s1491_s8, %s1491_s8, %s1492_s9  }
  0x49   : > { %p2679_p12 = scmp.ne.s32.totalorder %s2674_s26, 0 }
  0x4b   : > { %170 = sbr.rel (%p2679_p12) target bundleno = 494 (0x1ee), region = 32 }
  0x52   : > { %s1652_s11 = sand.u32 1, %s1479_s13   ;;  %p2680_p1 = scmp.ne.s32.totalorder %s2671_s23, 0 }
  0x53   : > { %s1189_s28 = sshll.u32 %s1652_s11, 9  ;;  %s173_s5 = scalar_lea.sflag [#allocation3], %s1652_s11 }
  0x54   : > { %s1656_s17 = scalar_lea.vmem [#allocation2], %s1189_s28 }
  0x55   : > { %1462 = dma.done.wait (%p2680_p1), %s173_s5, 8192  }
  0x56   : > { %1464 = vsyncadd (%p2680_p1), %s173_s5, 4294959104  ;;  %p2681_p11 = scmp.eq.s32.totalorder %s1537_s16, 0 }
  0x58   : > { %1466 = dma.done.wait (%p2681_p11), [#allocation6], 64   ;;  %p2682_p8 = pmov %p2681_p11 }
  0x59   : > { %v1667_v0 = vld [vmem:[%s1656_s17 + $0x40] sm:$0xff]  ;;  %v1670_v1 = vld [vmem:[%s1656_s17 + $0x48] sm:$0xff]  ;;  %v1673_v2 = vld [vmem:[%s1656_s17 + $0x50] sm:$0xff]  ;;  %s1191_s4 = sshll.u32 %s1652_s11, 8  ;;  %s1265_s10 = sshll.u32 %s1537_s16, 12 }
  0x5a   : > { %1468 = vsyncadd (%p2682_p8), [#allocation6], 4294967232  ;;  %v279_v3 = vadd.f32 %v1670_v1, %v1667_v0  ;;  %v1678_v4 = vld [vmem:[%s1656_s17] sm:$0xff]  ;;  %v1681_v5 = vld [vmem:[%s1656_s17 + $0x8] sm:$0xff]  ;;  %s2336_s7 = scalar_lea.vmem [#allocation7], %s1191_s4  ;;  %s2567_s20 = scalar_lea.hbm %s2620_s3, %s1265_s10 }
  0x5b   : > { %v1684_v6 = vld [vmem:[%s1656_s17 + $0x58] sm:$0xff]  ;;  %v1687_v7 = vld [vmem:[%s1656_s17 + $0x10] sm:$0xff]  ;;  %v269_v8 = vadd.f32 %v1681_v5, %v1678_v4  ;;  %v1692_v9 = vld [vmem:[%s1656_s17 + $0x60] sm:$0xff]  ;;  %s1097_s29 = sshll.u32 %s2336_s7, 4  ;;  %s1083_s30 = scalar_lea.sflag [#allocation4], %s1652_s11  ;;  %s2569_s29 = int_to_ptr.vmem [resolvable:$true] %s1097_s29 }
  0x5c   : > { %v280_v10 = vadd.f32 %v279_v3, %v1673_v2  ;;  %v1696_v11 = vld [vmem:[%s1656_s17 + $0x18] sm:$0xff]  ;;  %v1699_v12 = vld [vmem:[%s1656_s17 + $0x68] sm:$0xff]  ;;  %v1702_v13 = vld [vmem:[%s1656_s17 + $0x70] sm:$0xff]  ;;  %s1417_s22 = scalar_lea.vmem %s2569_s29, 4096  ;;  %p2771_p10 = scmp.ne.s32.totalorder %s2672_s24, 0 }
  0x5d   : > { %v270_v14 = vadd.f32 %v269_v8, %v1687_v7  ;;  %v284_v15 = vadd.f32 %v1699_v12, %v1692_v9  ;;  %v1708_v16 = vld [vmem:[%s1656_s17 + $0x20] sm:$0xff]  ;;  %v1711_v17 = vld [vmem:[%s1656_s17 + $0x28] sm:$0xff]  ;;  %v1714_v18 = vld [vmem:[%s1656_s17 + $0x30] sm:$0xff]  ;;  %p1418_p9 = scmp.ne.s32.totalorder %s2569_s29, %s1417_s22  ;;  %s1493_s27 = smov [#allocation7]  }
  0x5e   : > { %v281_v19 = vadd.f32 %v280_v10, %v1684_v6  ;;  %v1718_v20 = vld [vmem:[%s1656_s17 + $0x78] sm:$0xff]  ;;  %v274_v21 = vadd.f32 %v1711_v17, %v1708_v16  ;;  %v1723_v22 = vld [vmem:[%s1656_s17 + $0xa0] sm:$0xff]  ;;  %v1726_v23 = vld [vmem:[%s1656_s17 + $0xa8] sm:$0xff]  ;;  %s1421_s6 = sshll.u32 %s1493_s27, 4  ;;  %s1422_s6 = int_to_ptr.vmem [resolvable:$false] %s1421_s6 }
  0x5f   : > { %v271_v24 = vadd.f32 %v270_v14, %v1696_v11  ;;  %v285_v25 = vadd.f32 %v284_v15, %v1702_v13  ;;  %v1731_v26 = vld [vmem:[%s1656_s17 + $0x38] sm:$0xff]  ;;  %v1734_v27 = vld [vmem:[%s1656_s17 + $0xb0] sm:$0xff]  ;;  %v294_v28 = vadd.f32 %v1726_v23, %v1723_v22  ;;  %v1739_v29 = vld [vmem:[%s1656_s17 + $0x80] sm:$0xff]  ;;  %p1419_p2 = pnand %p1418_p9, %p2771_p10  ;;  %s1423_s8 = scalar_lea.vmem %s1422_s6, 8192 }
  0x60   : > { %282 = vadd.xlane.f32.xlu1 %v281_v19  ;;  %v275_v30 = vadd.f32 %v274_v21, %v1714_v18  ;;  %v1743_v31 = vld [vmem:[%s1656_s17 + $0xb8] sm:$0xff]  ;;  %v1746_v32 = vld [vmem:[%s1656_s17 + $0x88] sm:$0xff]  ;;  %v1749_v33 = vld [vmem:[%s1656_s17 + $0x90] sm:$0xff]  ;;  %p1424_p5 = scmp.lt.s32.totalorder %s2569_s29, %s1422_s6  ;;  %p1425_p0 = scmp.lt.s32.totalorder %s1423_s8, %s1417_s22 }
  0x61   : > { %272 = vadd.xlane.f32.xlu0 %v271_v24  ;;  %v286_v34 = vadd.f32 %v285_v25, %v1718_v20  ;;  %v295_v35 = vadd.f32 %v294_v28, %v1734_v27  ;;  %v289_v36 = vadd.f32 %v1746_v32, %v1739_v29  ;;  %v1756_v37 = vld [vmem:[%s1656_s17 + $0xe0] sm:$0xff]  ;;  %v1759_v38 = vld [vmem:[%s1656_s17 + $0xe8] sm:$0xff]  ;;  %v1762_v39 = vld [vmem:[%s1656_s17 + $0xf0] sm:$0xff]  ;;  %p1420_p4 = pneg %p1419_p2 }
  0x62   : > { %v276_v40 = vadd.f32 %v275_v30, %v1731_v26  ;;  %v1766_v41 = vld [vmem:[%s1656_s17 + $0x98] sm:$0xff]  ;;  %v304_v42 = vadd.f32 %v1759_v38, %v1756_v37  ;;  %v1771_v43 = vld [vmem:[%s1656_s17 + $0xc0] sm:$0xff]  ;;  %v1774_v44 = vld [vmem:[%s1656_s17 + $0xc8] sm:$0xff]  ;;  %p1426_p6 = por %p1425_p0, %p1424_p5 }
  0x63   : > { %v290_v45 = vadd.f32 %v289_v36, %v1749_v33  ;;  %v1778_v46 = vld [vmem:[%s1656_s17 + $0xd0] sm:$0xff]  ;;  %v299_v47 = vadd.f32 %v1774_v44, %v1771_v43  ;;  %v1783_v48 = vld [vmem:[%s1656_s17 + $0x120] sm:$0xff]  ;;  %v296_v49 = vadd.f32 %v295_v35, %v1743_v31  ;;  %v1787_v50 = vld [vmem:[%s1656_s17 + $0xf8] sm:$0xff] }
  0x64   : > { %287 = vadd.xlane.f32.xlu1 %v286_v34  ;;  %2683 = vst [vmem:[#allocation11_spill] sm:$0xff] %v1787_v50  ;;  %v305_v51 = vadd.f32 %v304_v42, %v1762_v39  ;;  %v1791_v52 = vld [vmem:[%s1656_s17 + $0xd8] sm:$0xff]  ;;  %v1794_v53 = vld [vmem:[%s1656_s17 + $0x128] sm:$0xff]  ;;  %v1799_v56 = vld [vmem:[%s1656_s17 + $0x130] sm:$0xff]  ;;  %p1427_p13 = pnand %p1426_p6, %p1420_p4 }
  0x65   : > { %277 = vadd.xlane.f32.xlu0 %v276_v40  ;;  %v291_v54 = vadd.f32 %v290_v45, %v1766_v41  ;;  %v300_v55 = vadd.f32 %v299_v47, %v1778_v46  ;;  %2684 = vst [vmem:[#allocation12_spill] sm:$0xff] %v1799_v56  ;;  %v314_v57 = vadd.f32 %v1794_v53, %v1783_v48  ;;  %v1804_v58 = vld [vmem:[%s1656_s17 + $0x100] sm:$0xff]  ;;  %v1807_v59 = vld [vmem:[%s1656_s17 + $0x108] sm:$0xff]  ;;  %v1810_v60 = vld [vmem:[%s1656_s17 + $0x110] sm:$0xff] }
  0x66   : > { %2685 = vst [vmem:[#allocation13_spill] sm:$0xff] %v1810_v60  ;;  %v309_v61 = vadd.f32 %v1807_v59, %v1804_v58  ;;  %v1815_v62 = vld [vmem:[%s1656_s17 + $0x160] sm:$0xff]  ;;  %v1818_v63 = vld [vmem:[%s1656_s17 + $0x168] sm:$0xff]  ;;  %v306_v8 = vadd.f32 %v305_v51, %v1787_v50  ;;  %v1825_v10 = vld [vmem:[%s1656_s17 + $0x138] sm:$0xff] }
  0x67   : > { %v1821_v3 = vld [vmem:[%s1656_s17 + $0x140] sm:$0xff]  ;;  %2686 = vst [vmem:[#allocation14_spill] sm:$0xff] %v1825_v10  ;;  %v315_v14 = vadd.f32 %v314_v57, %v1799_v56  ;;  %v1829_v15 = vld [vmem:[%s1656_s17 + $0x118] sm:$0xff]  ;;  %v324_v19 = vadd.f32 %v1818_v63, %v1815_v62  ;;  %v1834_v21 = vld [vmem:[%s1656_s17 + $0x148] sm:$0xff]  ;;  %v301_v24 = vadd.f32 %v300_v55, %v1791_v52 }
  0x68   : > { %297 = vadd.xlane.f32.xlu1 %v296_v49  ;;  %2687 = vst [vmem:[#allocation15_spill] sm:$0xff] %v1829_v15  ;;  %v310_v25 = vadd.f32 %v309_v61, %v1810_v60  ;;  %v1839_v28 = vld [vmem:[%s1656_s17 + $0x170] sm:$0xff]  ;;  %v319_v30 = vadd.f32 %v1834_v21, %v1821_v3  ;;  %v1844_v34 = vld [vmem:[%s1656_s17 + $0x1a0] sm:$0xff]  ;;  %v1847_v35 = vld [vmem:[%s1656_s17 + $0x1a8] sm:$0xff] }
  0x69   : > { %292 = vadd.xlane.f32.xlu0 %v291_v54  ;;  %2688 = vst [vmem:[#allocation16_spill] sm:$0xff] %v1839_v28  ;;  %v1850_v36 = vld [vmem:[%s1656_s17 + $0x150] sm:$0xff]  ;;  %v1853_v40 = vld [vmem:[%s1656_s17 + $0x180] sm:$0xff]  ;;  %v1856_v42 = vld [vmem:[%s1656_s17 + $0x188] sm:$0xff]  ;;  %v316_v45 = vadd.f32 %v315_v14, %v1825_v10  ;;  %v325_v49 = vadd.f32 %v324_v19, %v1839_v28  ;;  %v334_v54 = vadd.f32 %v1847_v35, %v1844_v34 }
  0x6a   : > { %2689 = vst [vmem:[#allocation17_spill] sm:$0xff] %v1850_v36  ;;  %v1860_v47 = vld [vmem:[%s1656_s17 + $0x178] sm:$0xff]  ;;  %v311_v55 = vadd.f32 %v310_v25, %v1829_v15  ;;  %v320_v57 = vadd.f32 %v319_v30, %v1850_v36  ;;  %v1871_v61 = vld [vmem:[%s1656_s17 + $0x1b0] sm:$0xff]  ;;  %v1876_v14 = vld [vmem:[%s1656_s17 + $0x1e0] sm:$0xff] }
  0x6b   : > { %2690 = vst [vmem:[#allocation18_spill] sm:$0xff] %v1860_v47  ;;  %v1864_v51 = vld [vmem:[%s1656_s17 + $0x158] sm:$0xff]  ;;  %2692 = vst [vmem:[#allocation20_spill] sm:$0xff] %v1871_v61  ;;  %v1879_v19 = vld [vmem:[%s1656_s17 + $0x1e8] sm:$0xff]  ;;  %v326_v25 = vadd.f32 %v325_v49, %v1860_v47  ;;  %v335_v30 = vadd.f32 %v334_v54, %v1871_v61 }
  0x6c   : > { %307 = vadd.xlane.f32.xlu1 %v306_v8  ;;  %2691 = vst [vmem:[#allocation19_spill] sm:$0xff] %v1864_v51  ;;  %v329_v8 = vadd.f32 %v1856_v42, %v1853_v40  ;;  %v1882_v28 = vld [vmem:[%s1656_s17 + $0x190] sm:$0xff]  ;;  %v1888_v10 = vld [vmem:[%s1656_s17 + $0x1c8] sm:$0xff]  ;;  %v344_v36 = vadd.f32 %v1879_v19, %v1876_v14  ;;  %v321_v56 = vadd.f32 %v320_v57, %v1864_v51  ;;  %v1896_v15 = vld [vmem:[%s1656_s17 + $0x1b8] sm:$0xff] }
  0x6d   : > { %302 = vadd.xlane.f32.xlu0 %v301_v24  ;;  %2693 = vst [vmem:[#allocation21_spill] sm:$0xff] %v1882_v28  ;;  %v1885_v24 = vld [vmem:[%s1656_s17 + $0x1c0] sm:$0xff]  ;;  %2694 = vst [vmem:[#allocation22_spill] sm:$0xff] %v1888_v10  ;;  %v1900_v50 = vld [vmem:[%s1656_s17 + $0x1f0] sm:$0xff]  ;;  %v336_v54 = vadd.f32 %v335_v30, %v1896_v15 }
  0x6e   : > { %v330_v60 = vadd.f32 %v329_v8, %v1882_v28  ;;  %2695 = vst [vmem:[#allocation23_spill] sm:$0xff] %v1900_v50  ;;  %v1905_v49 = vld [vmem:[%s1656_s17 + $0x198] sm:$0xff]  ;;  %v1908_v47 = vld [vmem:[%s1656_s17 + $0x1d0] sm:$0xff] }
  0x6f   : > { %v1914_v61 = vld [vmem:[%s1656_s17 + $0x1f8] sm:$0xff] }
  0x70   : > { %317 = vadd.xlane.f32.xlu1 %v316_v45  ;;  %v339_v45 = vadd.f32 %v1888_v10, %v1885_v24  ;;  %v331_v57 = vadd.f32 %v330_v60, %v1905_v49  ;;  %2696 = vst [vmem:[#allocation24_spill] sm:$0xff] %v1914_v61  ;;  %v1918_v28 = vld [vmem:[%s1656_s17 + $0x1d8] sm:$0xff] }
  0x71   : > { %312 = vadd.xlane.f32.xlu0 %v311_v55  ;;  %v345_v55 = vadd.f32 %v344_v36, %v1900_v50 }
  0x72   : > { %v340_v8 = vadd.f32 %v339_v45, %v1908_v47 }
  0x73   : > { %v346_v51 = vadd.f32 %v345_v55, %v1914_v61 }
  0x74   : > { %327 = vadd.xlane.f32.xlu1 %v326_v25  ;;  %v341_v10 = vadd.f32 %v340_v8, %v1918_v28 }
  0x75   : > { %322 = vadd.xlane.f32.xlu0 %v321_v56 }
  0x78   : > { %337 = vadd.xlane.f32.xlu1 %v336_v54 }
  0x79   : > { %332 = vadd.xlane.f32.xlu0 %v331_v57 }
  0x7c   : > { %347 = vadd.xlane.f32.xlu1 %v346_v51 }
  0x7d   : > { %342 = vadd.xlane.f32.xlu0 %v341_v10 }
  0xed   : > { %v283_v25 = vpop.xlane.xlu1 %282 }
  0xee   : > { %v352_v30 = vmul.f32 0.001953125, %v283_v25  ;;  %v273_v36 = vpop.xlane.xlu0 %272 }
  0xef   : > { %v350_v56 = vmul.f32 0.001953125, %v273_v36 }
  0xf0   : > { %v1923_v60 = vsub.f32 %v1667_v0, %v352_v30  ;;  %v1926_v50 = vsub.f32 %v1670_v1, %v352_v30  ;;  %v1929_v45 = vsub.f32 %v1673_v2, %v352_v30  ;;  %v1932_v54 = vsub.f32 %v1684_v6, %v352_v30 }
  0xf1   : > { %v1935_v55 = vsub.f32 %v1678_v4, %v350_v56  ;;  %v1938_v10 = vsub.f32 %v1681_v5, %v350_v56  ;;  %v288_v51 = vpop.xlane.xlu1 %287  ;;  %v1941_v57 = vsub.f32 %v1687_v7, %v350_v56  ;;  %v1944_v0 = vsub.f32 %v1696_v11, %v350_v56 }
  0xf2   : > { %2697 = vst [vmem:[#allocation25_spill] sm:$0xff] %v1923_v60  ;;  %2698 = vst [vmem:[#allocation26_spill] sm:$0xff] %v1926_v50  ;;  %v353_v1 = vmul.f32 0.001953125, %v288_v51  ;;  %v278_v8 = vpop.xlane.xlu0 %277  ;;  %v438_v2 = vmul.f32 %v1923_v60, %v1923_v60  ;;  %v439_v6 = vmul.f32 %v1926_v50, %v1926_v50  ;;  %v440_v4 = vmul.f32 %v1929_v45, %v1929_v45 }
  0xf3   : > { %2699 = vst [vmem:[#allocation27_spill] sm:$0xff] %v1929_v45  ;;  %2700 = vst [vmem:[#allocation28_spill] sm:$0xff] %v1932_v54  ;;  %v351_v5 = vmul.f32 0.001953125, %v278_v8  ;;  %v430_v25 = vmul.f32 %v1935_v55, %v1935_v55  ;;  %v431_v7 = vmul.f32 %v1938_v10, %v1938_v10  ;;  %v432_v11 = vmul.f32 %v1941_v57, %v1941_v57 }
  0xf4   : > { %2701 = vst [vmem:[#allocation29_spill] sm:$0xff] %v1935_v55  ;;  %2702 = vst [vmem:[#allocation30_spill] sm:$0xff] %v1938_v10  ;;  %v1959_v30 = vsub.f32 %v1692_v9, %v353_v1  ;;  %v1962_v36 = vsub.f32 %v1699_v12, %v353_v1  ;;  %v433_v56 = vmul.f32 %v1944_v0, %v1944_v0 }
  0xf5   : > { %2703 = vst [vmem:[#allocation31_spill] sm:$0xff] %v1941_v57  ;;  %2704 = vst [vmem:[#allocation32_spill] sm:$0xff] %v1944_v0  ;;  %v441_v51 = vmul.f32 %v1932_v54, %v1932_v54  ;;  %v1969_v8 = vsub.f32 %v1708_v16, %v351_v5  ;;  %v1972_v45 = vsub.f32 %v1711_v17, %v351_v5  ;;  %v298_v50 = vpop.xlane.xlu1 %297 }
  0xf6   : > { %v494_v60 = vadd.f32 %v431_v7, %v430_v25  ;;  %v504_v57 = vadd.f32 %v439_v6, %v438_v2  ;;  %v355_v9 = vmul.f32 0.001953125, %v298_v50  ;;  %v293_v10 = vpop.xlane.xlu0 %292  ;;  %v1975_v12 = vsub.f32 %v1714_v18, %v351_v5 }
  0xf7   : > { %v1978_v55 = vsub.f32 %v1731_v26, %v351_v5  ;;  %v1981_v0 = vsub.f32 %v1702_v13, %v353_v1  ;;  %v354_v54 = vmul.f32 0.001953125, %v293_v10  ;;  %v434_v17 = vmul.f32 %v1969_v8, %v1969_v8 }
  0xf8   : > { %v495_v16 = vadd.f32 %v494_v60, %v432_v11  ;;  %v505_v61 = vadd.f32 %v504_v57, %v440_v4  ;;  %v1986_v25 = vsub.f32 %v1723_v22, %v355_v9  ;;  %v1989_v50 = vsub.f32 %v1726_v23, %v355_v9 }
  0xf9   : > { %v435_v18 = vmul.f32 %v1972_v45, %v1972_v45  ;;  %v436_v26 = vmul.f32 %v1975_v12, %v1975_v12  ;;  %v1996_v13 = vsub.f32 %v1739_v29, %v354_v54  ;;  %v1999_v60 = vsub.f32 %v1746_v32, %v354_v54  ;;  %v308_v10 = vpop.xlane.xlu1 %307 }
  0xfa   : > { %v496_v57 = vadd.f32 %v495_v16, %v433_v56  ;;  %v506_v2 = vadd.f32 %v505_v61, %v441_v51  ;;  %v2001_v22 = vmul.f32 0.001953125, %v308_v10  ;;  %v303_v6 = vpop.xlane.xlu0 %302  ;;  %v437_v23 = vmul.f32 %v1978_v55, %v1978_v55 }
  0xfb   : > { %v499_v4 = vadd.f32 %v435_v18, %v434_v17  ;;  %v2006_v5 = vsub.f32 %v1718_v20, %v353_v1  ;;  %v356_v7 = vmul.f32 0.001953125, %v303_v6  ;;  %v442_v29 = vmul.f32 %v1959_v30, %v1959_v30 }
  0xfc   : > { %497 = vadd.xlane.f32.xlu0 %v496_v57  ;;  %v443_v32 = vmul.f32 %v1962_v36, %v1962_v36  ;;  %v444_v61 = vmul.f32 %v1981_v0, %v1981_v0  ;;  %v2016_v11 = vsub.f32 %v1756_v37, %v2001_v22  ;;  %v2020_v56 = vsub.f32 %v1759_v38, %v2001_v22 }
  0xfd   : > { %v500_v20 = vadd.f32 %v499_v4, %v436_v26  ;;  %v445_v1 = vmul.f32 %v2006_v5, %v2006_v5  ;;  %v2025_v51 = vsub.f32 %v1771_v43, %v356_v7  ;;  %v2028_v16 = vsub.f32 %v1774_v44, %v356_v7  ;;  %v318_v17 = vpop.xlane.xlu1 %317 }
  0xfe   : > { %2705 = vst [vmem:[#allocation33_spill] sm:$0xff] %v2016_v11  ;;  %v509_v18 = vadd.f32 %v443_v32, %v442_v29  ;;  %v2031_v10 = vsub.f32 %v1749_v33, %v354_v54  ;;  %v2033_v37 = vmul.f32 0.001953125, %v318_v17  ;;  %v313_v57 = vpop.xlane.xlu0 %312  ;;  %v2036_v26 = vsub.f32 %v1766_v41, %v354_v54 }
  0xff   : > { %v501_v38 = vadd.f32 %v500_v20, %v437_v23  ;;  %v446_v6 = vmul.f32 %v1996_v13, %v1996_v13  ;;  %v358_v43 = vmul.f32 0.001953125, %v313_v57  ;;  %v447_v44 = vmul.f32 %v1999_v60, %v1999_v60 }
 0x100   : > { %507 = vadd.xlane.f32.xlu0 %v506_v2  ;;  %v510_v4 = vadd.f32 %v509_v18, %v444_v61  ;;  %v448_v33 = vmul.f32 %v2031_v10, %v2031_v10  ;;  %v2046_v29 = vsub.f32 %v1783_v48, %v2033_v37  ;;  %v2050_v41 = vsub.f32 %v1794_v53, %v2033_v37 }
 0x101   : > { %502 = vadd.xlane.f32.xlu1 %v501_v38  ;;  %v449_v54 = vmul.f32 %v2036_v26, %v2036_v26  ;;  %v2055_v2 = vsub.f32 %v1734_v27, %v355_v9  ;;  %v2058_v23 = vsub.f32 %v1804_v58, %v358_v43  ;;  %v2061_v32 = vsub.f32 %v1807_v59, %v358_v43  ;;  %v328_v61 = vpop.xlane.xlu1 %327 }
 0x102   : > { %2706 = vst [vmem:[#allocation34_spill] sm:$0xff] %v2050_v41  ;;  %v511_v48 = vadd.f32 %v510_v4, %v445_v1  ;;  %v514_v20 = vadd.f32 %v447_v44, %v446_v6  ;;  %v2063_v17 = vmul.f32 0.001953125, %v328_v61  ;;  %v323_v53 = vpop.xlane.xlu0 %322  ;;  %v2066_v18 = vsub.f32 %v1743_v31, %v355_v9 }
 0x103   : > { %2707 = vst [vmem:[#allocation35_spill] sm:$0xff] %v2061_v32  ;;  %v450_v57 = vmul.f32 %v1986_v25, %v1986_v25  ;;  %v451_v27 = vmul.f32 %v1989_v50, %v1989_v50  ;;  %v2072_v58 = vmul.f32 0.001953125, %v323_v53  ;;  %v452_v59 = vmul.f32 %v2055_v2, %v2055_v2 }
 0x104   : > { %v515_v38 = vadd.f32 %v514_v20, %v448_v33  ;;  %v2077_v1 = vsub.f32 %v1778_v46, %v356_v7  ;;  %v2081_v6 = vsub.f32 %v1815_v62, %v2063_v17  ;;  %v2085_v31 = vsub.f32 %v1818_v63, %v2063_v17 }
 0x105   : > { %512 = vadd.xlane.f32.xlu1 %v511_v48  ;;  %v453_v9 = vmul.f32 %v2066_v18, %v2066_v18  ;;  %v519_v4 = vadd.f32 %v451_v27, %v450_v57  ;;  %v2091_v44 = vsub.f32 %v1821_v3, %v2072_v58  ;;  %v2095_v46 = vsub.f32 %v1834_v21, %v2072_v58  ;;  %v338_v62 = vpop.xlane.xlu1 %337 }
 0x106   : > { %v516_v33 = vadd.f32 %v515_v38, %v449_v54  ;;  %v2098_v61 = vsub.f32 %v1791_v52, %v356_v7  ;;  %v2100_v63 = vmul.f32 0.001953125, %v338_v62  ;;  %v333_v48 = vpop.xlane.xlu0 %332  ;;  %v454_v53 = vmul.f32 %v2025_v51, %v2025_v51  ;;  %v2712_v62 = vld [vmem:[#allocation11_spill] sm:$0xff] }
 0x107   : > { %2708 = vst [vmem:[#allocation36_spill] sm:$0xff] %v2091_v44  ;;  %2709 = vst [vmem:[#allocation37_spill] sm:$0xff] %v2095_v46  ;;  %v520_v20 = vadd.f32 %v519_v4, %v452_v59  ;;  %v455_v3 = vmul.f32 %v2028_v16, %v2028_v16  ;;  %v2106_v57 = vmul.f32 0.001953125, %v333_v48  ;;  %v456_v21 = vmul.f32 %v2077_v1, %v2077_v1 }
 0x108   : > { %517 = vadd.xlane.f32.xlu0 %v516_v33  ;;  %v457_v52 = vmul.f32 %v2098_v61, %v2098_v61  ;;  %v2114_v7 = vsub.f32 %v1762_v39, %v2001_v22  ;;  %v2118_v54 = vsub.f32 %v1844_v34, %v2100_v63  ;;  %v2122_v27 = vsub.f32 %v1847_v35, %v2100_v63 }
 0x109   : > { %v521_v38 = vadd.f32 %v520_v20, %v453_v9  ;;  %v524_v59 = vadd.f32 %v455_v3, %v454_v53  ;;  %v2126_v4 = vsub.f32 %v1853_v40, %v2106_v57  ;;  %v2130_v33 = vsub.f32 %v1856_v42, %v2106_v57  ;;  %v348_v39 = vpop.xlane.xlu1 %347  ;;  %v2714_v3 = vld [vmem:[#allocation13_spill] sm:$0xff] }
 0x10a   : > { %2710 = vst [vmem:[#allocation38_spill] sm:$0xff] %v2114_v7  ;;  %2711 = vst [vmem:[#allocation39_spill] sm:$0xff] %v2122_v27  ;;  %v2134_v48 = vsub.f32 %v2712_v62, %v2001_v22  ;;  %v458_v34 = vmul.f32 %v2016_v11, %v2016_v11  ;;  %v2138_v9 = vmul.f32 0.001953125, %v348_v39  ;;  %v343_v20 = vpop.xlane.xlu0 %342  ;;  %v459_v40 = vmul.f32 %v2020_v56, %v2020_v56  ;;  %v2716_v11 = vld [vmem:[#allocation15_spill] sm:$0xff] }
 0x10b   : > { %522 = vadd.xlane.f32.xlu1 %v521_v38  ;;  %v525_v35 = vadd.f32 %v524_v59, %v456_v21  ;;  %v460_v42 = vmul.f32 %v2114_v7, %v2114_v7  ;;  %v2144_v53 = vmul.f32 0.001953125, %v343_v20  ;;  %v2149_v62 = vsub.f32 %v2714_v3, %v358_v43  ;;  %v2721_v3 = vld [vmem:[#allocation22_spill] sm:$0xff] }
 0x10c   : > { %2713 = vst [vmem:[#allocation11_spill] sm:$0xff] %v2134_v48  ;;  %v461_v22 = vmul.f32 %v2134_v48, %v2134_v48  ;;  %v2152_v38 = vsub.f32 %v2716_v11, %v358_v43  ;;  %v2156_v59 = vsub.f32 %v1876_v14, %v2138_v9  ;;  %v2160_v39 = vsub.f32 %v1879_v19, %v2138_v9 }
 0x10d   : > { %2715 = vst [vmem:[#allocation13_spill] sm:$0xff] %v2149_v62  ;;  %v526_v21 = vadd.f32 %v525_v35, %v457_v52  ;;  %v529_v20 = vadd.f32 %v459_v40, %v458_v34  ;;  %v2164_v7 = vsub.f32 %v1885_v24, %v2144_v53  ;;  %v2168_v48 = vsub.f32 %v2721_v3, %v2144_v53  ;;  %v2723_v24 = vld [vmem:[#allocation12_spill] sm:$0xff]  ;;  %v2724_v40 = vld [vmem:[#allocation14_spill] sm:$0xff] }
 0x10e   : > { %2717 = vst [vmem:[#allocation15_spill] sm:$0xff] %v2152_v38  ;;  %2718 = vst [vmem:[#allocation40_spill] sm:$0xff] %v2156_v59  ;;  %v462_v11 = vmul.f32 %v2058_v23, %v2058_v23  ;;  %v463_v14 = vmul.f32 %v2061_v32, %v2061_v32  ;;  %v464_v19 = vmul.f32 %v2149_v62, %v2149_v62 }
 0x10f   : > { %2719 = vst [vmem:[#allocation41_spill] sm:$0xff] %v2160_v39  ;;  %2720 = vst [vmem:[#allocation42_spill] sm:$0xff] %v2164_v7  ;;  %527 = vadd.xlane.f32.xlu0 %v526_v21  ;;  %v530_v43 = vadd.f32 %v529_v20, %v460_v42  ;;  %v465_v52 = vmul.f32 %v2152_v38, %v2152_v38  ;;  %v2180_v34 = vsub.f32 %v2723_v24, %v2033_v37  ;;  %v2725_v38 = vld [vmem:[#allocation17_spill] sm:$0xff] }
 0x110   : > { %2722 = vst [vmem:[#allocation22_spill] sm:$0xff] %v2168_v48  ;;  %v534_v35 = vadd.f32 %v463_v14, %v462_v11  ;;  %v2184_v3 = vsub.f32 %v2724_v40, %v2033_v37  ;;  %v466_v32 = vmul.f32 %v2046_v29, %v2046_v29  ;;  %v467_v42 = vmul.f32 %v2050_v41, %v2050_v41  ;;  %v2727_v11 = vld [vmem:[#allocation19_spill] sm:$0xff] }
 0x111   : > { %v531_v21 = vadd.f32 %v530_v43, %v461_v22  ;;  %v468_v20 = vmul.f32 %v2180_v34, %v2180_v34  ;;  %v2194_v62 = vsub.f32 %v2725_v38, %v2072_v58  ;;  %v2198_v14 = vsub.f32 %v2727_v11, %v2072_v58  ;;  %v2729_v58 = vld [vmem:[#allocation16_spill] sm:$0xff] }
 0x112   : > { %v535_v37 = vadd.f32 %v534_v35, %v464_v19  ;;  %v469_v24 = vmul.f32 %v2184_v3, %v2184_v3  ;;  %v539_v40 = vadd.f32 %v467_v42, %v466_v32  ;;  %v470_v41 = vmul.f32 %v2091_v44, %v2091_v44  ;;  %v2730_v32 = vld [vmem:[#allocation18_spill] sm:$0xff]  ;;  %v2731_v44 = vld [vmem:[#allocation21_spill] sm:$0xff] }
 0x113   : > { %2726 = vst [vmem:[#allocation12_spill] sm:$0xff] %v2194_v62  ;;  %2728 = vst [vmem:[#allocation14_spill] sm:$0xff] %v2198_v14  ;;  %532 = vadd.xlane.f32.xlu1 %v531_v21  ;;  %v471_v22 = vmul.f32 %v2095_v46, %v2095_v46  ;;  %v472_v38 = vmul.f32 %v2194_v62, %v2194_v62  ;;  %v473_v43 = vmul.f32 %v2198_v14, %v2198_v14 }
 0x114   : > { %v2212_v19 = vsub.f32 %v2729_v58, %v2063_v17  ;;  %v536_v35 = vadd.f32 %v535_v37, %v465_v52  ;;  %v540_v11 = vadd.f32 %v539_v40, %v468_v20  ;;  %v2216_v42 = vsub.f32 %v2730_v32, %v2063_v17 }
 0x115   : > { %v474_v21 = vmul.f32 %v2081_v6, %v2081_v6  ;;  %v544_v46 = vadd.f32 %v471_v22, %v470_v41  ;;  %v475_v62 = vmul.f32 %v2085_v31, %v2085_v31  ;;  %v2226_v58 = vsub.f32 %v2731_v44, %v2106_v57 }
 0x116   : > { %v476_v14 = vmul.f32 %v2212_v19, %v2212_v19  ;;  %537 = vadd.xlane.f32.xlu0 %v536_v35  ;;  %v541_v52 = vadd.f32 %v540_v11, %v469_v24  ;;  %v477_v17 = vmul.f32 %v2216_v42, %v2216_v42  ;;  %v2232_v20 = vsub.f32 %v1905_v49, %v2106_v57  ;;  %v2732_v35 = vld [vmem:[#allocation20_spill] sm:$0xff] }
 0x117   : > { %v478_v41 = vmul.f32 %v2126_v4, %v2126_v4  ;;  %v545_v37 = vadd.f32 %v544_v46, %v472_v38  ;;  %v549_v40 = vadd.f32 %v475_v62, %v474_v21  ;;  %v479_v22 = vmul.f32 %v2130_v33, %v2130_v33 }
 0x118   : > { %v480_v44 = vmul.f32 %v2226_v58, %v2226_v58  ;;  %542 = vadd.xlane.f32.xlu1 %v541_v52  ;;  %v481_v24 = vmul.f32 %v2232_v20, %v2232_v20  ;;  %v2244_v11 = vsub.f32 %v2732_v35, %v2100_v63  ;;  %v2248_v49 = vsub.f32 %v1896_v15, %v2100_v63 }
 0x119   : > { %v482_v46 = vmul.f32 %v2118_v54, %v2118_v54  ;;  %v546_v57 = vadd.f32 %v545_v37, %v473_v43  ;;  %v550_v62 = vadd.f32 %v549_v40, %v476_v14  ;;  %v554_v38 = vadd.f32 %v479_v22, %v478_v41 }
 0x11a   : > { %2733 = vst [vmem:[#allocation17_spill] sm:$0xff] %v2244_v11  ;;  %2734 = vst [vmem:[#allocation19_spill] sm:$0xff] %v2248_v49  ;;  %v483_v32 = vmul.f32 %v2122_v27, %v2122_v27  ;;  %v484_v21 = vmul.f32 %v2244_v11, %v2244_v11  ;;  %v485_v52 = vmul.f32 %v2248_v49, %v2248_v49  ;;  %v2746_v49 = vld [vmem:[#allocation26_spill] sm:$0xff] }
 0x11b   : > { %v2260_v35 = vsub.f32 %v1908_v47, %v2144_v53  ;;  %v2264_v15 = vsub.f32 %v1918_v28, %v2144_v53  ;;  %547 = vadd.xlane.f32.xlu0 %v546_v57  ;;  %v551_v63 = vadd.f32 %v550_v62, %v477_v17  ;;  %v555_v14 = vadd.f32 %v554_v38, %v480_v44  ;;  %v2737_v47 = vld [vmem:[#allocation23_spill] sm:$0xff]  ;;  %v2739_v17 = vld [vmem:[#allocation24_spill] sm:$0xff] }
 0x11c   : > { %v559_v43 = vadd.f32 %v483_v32, %v482_v46  ;;  %v486_v41 = vmul.f32 %v2164_v7, %v2164_v7  ;;  %v487_v37 = vmul.f32 %v2168_v48, %v2168_v48  ;;  %v2274_v22 = vsub.f32 %v2737_v47, %v2138_v9  ;;  %v2745_v7 = vld [vmem:[#allocation25_spill] sm:$0xff] }
 0x11d   : > { %2735 = vst [vmem:[#allocation16_spill] sm:$0xff] %v2260_v35  ;;  %2736 = vst [vmem:[#allocation18_spill] sm:$0xff] %v2264_v15  ;;  %v488_v40 = vmul.f32 %v2260_v35, %v2260_v35  ;;  %552 = vadd.xlane.f32.xlu1 %v551_v63  ;;  %v556_v28 = vadd.f32 %v555_v14, %v481_v24  ;;  %v2278_v44 = vsub.f32 %v2739_v17, %v2138_v9 }
 0x11e   : > { %2738 = vst [vmem:[#allocation21_spill] sm:$0xff] %v2274_v22  ;;  %v560_v53 = vadd.f32 %v559_v43, %v484_v21  ;;  %v490_v46 = vmul.f32 %v2156_v59, %v2156_v59  ;;  %v489_v57 = vmul.f32 %v2264_v15, %v2264_v15  ;;  %v564_v62 = vadd.f32 %v487_v37, %v486_v41 }
 0x11f   : > { %2740 = vst [vmem:[#allocation20_spill] sm:$0xff] %v2278_v44  ;;  %v491_v38 = vmul.f32 %v2160_v39, %v2160_v39  ;;  %v492_v32 = vmul.f32 %v2274_v22, %v2274_v22  ;;  %557 = vadd.xlane.f32.xlu0 %v556_v28  ;;  %v493_v9 = vmul.f32 %v2278_v44, %v2278_v44  ;;  %v688_v37 = vlaneseq  ;;  %v2743_v22 = vld [vmem:[#allocation31_spill] sm:$0xff] }
 0x120   : > { %v561_v24 = vadd.f32 %v560_v53, %v485_v52  ;;  %v565_v21 = vadd.f32 %v564_v62, %v488_v40 }
 0x121   : > { %v569_v63 = vadd.f32 %v491_v38, %v490_v46  ;;  %v689_v15 = vshrl.u32 %v688_v37, 7  ;;  %v686_v38 = vld [vmem:[#allocation5] sm:$0xf] }
 0x122   : > { %562 = vadd.xlane.f32.xlu1 %v561_v24  ;;  %v566_v14 = vadd.f32 %v565_v21, %v489_v57 }
 0x123   : > { %v570_v43 = vadd.f32 %v569_v63, %v492_v32  ;;  %v690_v44 = vsub.s32 0, %v689_v15  ;;  %v694_v46 = vsub.s32 1, %v689_v15  ;;  %v698_v32 = vsub.s32 2, %v689_v15 }
 0x124   : > { %567 = vadd.xlane.f32.xlu0 %v566_v14  ;;  %v702_v24 = vsub.s32 3, %v689_v15 }
 0x125   : > { %v571_v47 = vadd.f32 %v570_v43, %v493_v9  ;;  %v772_v9 = vld [vmem:[%s2619_s2] sm:$0xf]  ;;  %v2293_v14 = vrot.slane %v686_v38, %v690_v44 }
 0x126   : > { %v2301_v37 = vrot.slane %v772_v9, %v690_v44 }
 0x127   : > { %572 = vadd.xlane.f32.xlu1 %v571_v47  ;;  %v2297_v47 = vrot.slane %v686_v38, %v698_v32 }
 0x189   : > { %v498_v41 = vpop.xlane.xlu0 %497 }
 0x18a   : > { %v574_v17 = vmul.f32 0.001953125, %v498_v41  ;;  %v2299_v41 = vrot.slane %v686_v38, %v702_v24 }
 0x18c   : > { %v590_v39 = vadd.f32 1e-05, %v574_v17  ;;  %v2303_v17 = vrot.slane %v772_v9, %v694_v46 }
 0x18d   : > { %v508_v59 = vpop.xlane.xlu0 %507 }
 0x18e   : > { %1327 = vrsqrt.f32 %v590_v39  ;;  %v503_v28 = vpop.xlane.xlu1 %502  ;;  %v576_v52 = vmul.f32 0.001953125, %v508_v59  ;;  %v2295_v59 = vrot.slane %v686_v38, %v694_v46  ;;  %v2744_v38 = vld [vmem:[#allocation32_spill] sm:$0xff] }
 0x18f   : > { %v575_v40 = vmul.f32 0.001953125, %v503_v28  ;;  %v2305_v28 = vrot.slane %v772_v9, %v698_v32 }
 0x190   : > { %v592_v53 = vadd.f32 1e-05, %v576_v52  ;;  %v2307_v52 = vrot.slane %v772_v9, %v702_v24 }
 0x191   : > { %v591_v62 = vadd.f32 1e-05, %v575_v40 }
 0x192   : > { %1329 = vrsqrt.f32 %v592_v53  ;;  %v513_v57 = vpop.xlane.xlu1 %512 }
 0x193   : > { %1331 = vrsqrt.f32 %v591_v62  ;;  %v577_v21 = vmul.f32 0.001953125, %v513_v57  ;;  %v2741_v62 = vld [vmem:[#allocation29_spill] sm:$0xff] }
 0x195   : > { %v593_v63 = vadd.f32 1e-05, %v577_v21  ;;  %v518_v39 = vpop.xlane.xlu0 %517  ;;  %v2742_v21 = vld [vmem:[#allocation30_spill] sm:$0xff] }
 0x196   : > { %v578_v43 = vmul.f32 0.001953125, %v518_v39 }
 0x197   : > { %1333 = vrsqrt.f32 %v593_v63 }
 0x198   : > { %v1328_v15 = vpop.eup %1327  ;;  %v594_v40 = vadd.f32 1e-05, %v578_v43  ;;  %v523_v53 = vpop.xlane.xlu1 %522 }
 0x199   : > { %v622_v57 = vmul.f32 %v1328_v15, %v2741_v62  ;;  %v623_v39 = vmul.f32 %v1328_v15, %v2742_v21  ;;  %v624_v35 = vmul.f32 %v1328_v15, %v2743_v22  ;;  %v625_v48 = vmul.f32 %v1328_v15, %v2744_v38 }
 0x19a   : > { %1335 = vrsqrt.f32 %v594_v40  ;;  %v579_v44 = vmul.f32 0.001953125, %v523_v53 }
 0x19b   : > { %v708_v46 = vmul.f32 %v2293_v14, %v622_v57  ;;  %v709_v32 = vmul.f32 %v2295_v59, %v623_v39  ;;  %v710_v24 = vmul.f32 %v2297_v47, %v624_v35  ;;  %v711_v9 = vmul.f32 %v2299_v41, %v625_v48 }
 0x19c   : > { %v1330_v63 = vpop.eup %1329  ;;  %v2318_v43 = vadd.f32 1e-05, %v579_v44  ;;  %v2324_v53 = vpop.xlane.xlu0 %527 }
 0x19d   : > { %v1332_v62 = vpop.eup %1331  ;;  %v794_v21 = vadd.f32 %v2301_v37, %v708_v46  ;;  %v795_v22 = vadd.f32 %v2303_v17, %v709_v32  ;;  %v796_v15 = vadd.f32 %v2305_v28, %v710_v24  ;;  %v797_v40 = vadd.f32 %v2307_v52, %v711_v9 }
 0x19e   : > { %v626_v57 = vmul.f32 %v1332_v62, %v1969_v8  ;;  %v627_v35 = vmul.f32 %v1332_v62, %v1972_v45  ;;  %v628_v48 = vmul.f32 %v1332_v62, %v1975_v12  ;;  %v629_v39 = vmul.f32 %v1332_v62, %v1978_v55  ;;  %v2747_v55 = vld [vmem:[#allocation27_spill] sm:$0xff] }
 0x19f   : > { %v1232_v38 = vpack.c.bf16 %v795_v22, %v794_v21  ;;  %v1233_v44 = vpack.c.bf16 %v797_v40, %v796_v15  ;;  %v630_v46 = vmul.f32 %v1330_v63, %v2745_v7  ;;  %v631_v32 = vmul.f32 %v1330_v63, %v2746_v49  ;;  %v2748_v7 = vld [vmem:[#allocation28_spill] sm:$0xff] }
 0x1a0   : > { %v712_v24 = vmul.f32 %v2293_v14, %v626_v57  ;;  %v713_v9 = vmul.f32 %v2295_v59, %v627_v35  ;;  %v714_v11 = vmul.f32 %v2297_v47, %v628_v48  ;;  %v715_v8 = vmul.f32 %v2299_v41, %v629_v39  ;;  %v533_v27 = vpop.xlane.xlu1 %532 }
 0x1a1   : > { %v1334_v45 = vpop.eup %1333  ;;  %1050 = vst [vmem:[%s2336_s7] sm:$0xff] %v1232_v38  ;;  %1051 = vst [vmem:[%s2336_s7 + $0x8] sm:$0xff] %v1233_v44  ;;  %v632_v12 = vmul.f32 %v1330_v63, %v2747_v55  ;;  %v633_v49 = vmul.f32 %v1330_v63, %v2748_v7  ;;  %v716_v62 = vmul.f32 %v2293_v14, %v630_v46  ;;  %1337 = vrsqrt.f32 %v2318_v43 }
 0x1a2   : > { %v717_v21 = vmul.f32 %v2295_v59, %v631_v32  ;;  %v798_v22 = vadd.f32 %v2301_v37, %v712_v24  ;;  %v799_v15 = vadd.f32 %v2303_v17, %v713_v9  ;;  %v800_v40 = vadd.f32 %v2305_v28, %v714_v11 }
 0x1a3   : > { %v801_v57 = vadd.f32 %v2307_v52, %v715_v8  ;;  %v718_v35 = vmul.f32 %v2297_v47, %v632_v12  ;;  %v719_v48 = vmul.f32 %v2299_v41, %v633_v49  ;;  %v802_v63 = vadd.f32 %v2301_v37, %v716_v62  ;;  %v538_v38 = vpop.xlane.xlu0 %537 }
 0x1a4   : > { %v803_v39 = vadd.f32 %v2303_v17, %v717_v21  ;;  %v1336_v44 = vpop.eup %1335  ;;  %v1234_v46 = vpack.c.bf16 %v799_v15, %v798_v22  ;;  %v634_v24 = vmul.f32 %v1334_v45, %v1959_v30  ;;  %v635_v11 = vmul.f32 %v1334_v45, %v1962_v36 }
 0x1a5   : > { %v1235_v32 = vpack.c.bf16 %v801_v57, %v800_v40  ;;  %v804_v9 = vadd.f32 %v2305_v28, %v718_v35  ;;  %v805_v8 = vadd.f32 %v2307_v52, %v719_v48  ;;  %v636_v12 = vmul.f32 %v1334_v45, %v1981_v0  ;;  %v543_v7 = vpop.xlane.xlu1 %542 }
 0x1a6   : > { %v1236_v55 = vpack.c.bf16 %v803_v39, %v802_v63  ;;  %1052 = vst [vmem:[%s2336_s7 + $0x10] sm:$0xff] %v1234_v46  ;;  %v637_v49 = vmul.f32 %v1334_v45, %v2006_v5  ;;  %v720_v62 = vmul.f32 %v2293_v14, %v634_v24  ;;  %v721_v21 = vmul.f32 %v2295_v59, %v635_v11 }
 0x1a7   : > { %1053 = vst [vmem:[%s2336_s7 + $0x18] sm:$0xff] %v1235_v32  ;;  %v638_v30 = vmul.f32 %v1336_v44, %v1996_v13  ;;  %v1237_v36 = vpack.c.bf16 %v805_v8, %v804_v9  ;;  %v722_v22 = vmul.f32 %v2297_v47, %v636_v12  ;;  %v639_v15 = vmul.f32 %v1336_v44, %v1999_v60 }
 0x1a8   : > { %1054 = vst [vmem:[%s2336_s7 + $0x20] sm:$0xff] %v1236_v55  ;;  %v640_v0 = vmul.f32 %v1336_v44, %v2031_v10  ;;  %v723_v40 = vmul.f32 %v2299_v41, %v637_v49  ;;  %v806_v57 = vadd.f32 %v2301_v37, %v720_v62  ;;  %v807_v5 = vadd.f32 %v2303_v17, %v721_v21  ;;  %v548_v35 = vpop.xlane.xlu0 %547 }
 0x1a9   : > { %v641_v45 = vmul.f32 %v1336_v44, %v2036_v26  ;;  %1055 = vst [vmem:[%s2336_s7 + $0x28] sm:$0xff] %v1237_v36  ;;  %v808_v13 = vadd.f32 %v2305_v28, %v722_v22  ;;  %v724_v48 = vmul.f32 %v2293_v14, %v638_v30  ;;  %v725_v63 = vmul.f32 %v2295_v59, %v639_v15 }
 0x1aa   : > { %v726_v60 = vmul.f32 %v2297_v47, %v640_v0  ;;  %v809_v10 = vadd.f32 %v2307_v52, %v723_v40  ;;  %v1238_v39 = vpack.c.bf16 %v807_v5, %v806_v57  ;;  %v553_v26 = vpop.xlane.xlu1 %552  ;;  %v580_v11 = vmul.f32 0.001953125, %v2324_v53 }
 0x1ab   : > { %v727_v46 = vmul.f32 %v2299_v41, %v641_v45  ;;  %v810_v44 = vadd.f32 %v2301_v37, %v724_v48  ;;  %v811_v32 = vadd.f32 %v2303_v17, %v725_v63  ;;  %v581_v55 = vmul.f32 0.001953125, %v533_v27 }
 0x1ac   : > { %v812_v24 = vadd.f32 %v2305_v28, %v726_v60  ;;  %v1239_v9 = vpack.c.bf16 %v809_v10, %v808_v13  ;;  %1056 = vst [vmem:[%s2336_s7 + $0x30] sm:$0xff] %v1238_v39  ;;  %v582_v12 = vmul.f32 0.001953125, %v538_v38  ;;  %v558_v49 = vpop.xlane.xlu0 %557  ;;  %v596_v62 = vadd.f32 1e-05, %v580_v11  ;;  %v1338_v13 = vpop.eup %1337 }
 0x1ad   : > { %v813_v8 = vadd.f32 %v2307_v52, %v727_v46  ;;  %v1240_v43 = vpack.c.bf16 %v811_v32, %v810_v44  ;;  %v583_v21 = vmul.f32 0.001953125, %v543_v7  ;;  %v584_v30 = vmul.f32 0.001953125, %v548_v35 }
 0x1ae   : > { %1057 = vst [vmem:[%s2336_s7 + $0x38] sm:$0xff] %v1239_v9  ;;  %v597_v22 = vadd.f32 1e-05, %v581_v55  ;;  %v598_v15 = vadd.f32 1e-05, %v582_v12  ;;  %v585_v0 = vmul.f32 0.001953125, %v553_v26  ;;  %1339 = vrsqrt.f32 %v596_v62 }
 0x1af   : > { %v1241_v36 = vpack.c.bf16 %v813_v8, %v812_v24  ;;  %v563_v40 = vpop.xlane.xlu1 %562  ;;  %1058 = vst [vmem:[%s2336_s7 + $0x40] sm:$0xff] %v1240_v43  ;;  %v599_v53 = vadd.f32 1e-05, %v583_v21  ;;  %v600_v57 = vadd.f32 1e-05, %v584_v30  ;;  %v586_v5 = vmul.f32 0.001953125, %v558_v49 }
 0x1b0   : > { %1341 = vrsqrt.f32 %v597_v22  ;;  %v601_v27 = vadd.f32 1e-05, %v585_v0  ;;  %v587_v38 = vmul.f32 0.001953125, %v563_v40  ;;  %v642_v10 = vmul.f32 %v1338_v13, %v1986_v25 }
 0x1b1   : > { %1059 = vst [vmem:[%s2336_s7 + $0x48] sm:$0xff] %v1241_v36  ;;  %1343 = vrsqrt.f32 %v598_v15  ;;  %v568_v45 = vpop.xlane.xlu0 %567  ;;  %v602_v7 = vadd.f32 1e-05, %v586_v5  ;;  %v643_v39 = vmul.f32 %v1338_v13, %v1989_v50  ;;  %v644_v46 = vmul.f32 %v1338_v13, %v2055_v2  ;;  %v2749_v15 = vld [vmem:[#allocation33_spill] sm:$0xff] }
 0x1b2   : > { %1345 = vrsqrt.f32 %v599_v53  ;;  %v603_v48 = vadd.f32 1e-05, %v587_v38  ;;  %v588_v63 = vmul.f32 0.001953125, %v568_v45  ;;  %v645_v26 = vmul.f32 %v1338_v13, %v2066_v18  ;;  %v2751_v38 = vld [vmem:[#allocation11_spill] sm:$0xff] }
 0x1b3   : > { %1347 = vrsqrt.f32 %v600_v57  ;;  %v728_v44 = vmul.f32 %v2293_v14, %v642_v10  ;;  %v729_v32 = vmul.f32 %v2295_v59, %v643_v39  ;;  %v730_v24 = vmul.f32 %v2297_v47, %v644_v46 }
 0x1b4   : > { %v573_v35 = vpop.xlane.xlu1 %572  ;;  %1349 = vrsqrt.f32 %v601_v27  ;;  %v731_v11 = vmul.f32 %v2299_v41, %v645_v26  ;;  %v2396_v9 = vadd.f32 1e-05, %v588_v63 }
 0x1b5   : > { %v589_v60 = vmul.f32 0.001953125, %v573_v35  ;;  %1351 = vrsqrt.f32 %v602_v7  ;;  %v814_v50 = vadd.f32 %v2301_v37, %v728_v44  ;;  %v815_v2 = vadd.f32 %v2303_v17, %v729_v32 }
 0x1b6   : > { %1353 = vrsqrt.f32 %v603_v48  ;;  %v816_v18 = vadd.f32 %v2305_v28, %v730_v24  ;;  %v817_v55 = vadd.f32 %v2307_v52, %v731_v11 }
 0x1b7   : > { %v2398_v8 = vadd.f32 1e-05, %v589_v60  ;;  %v1242_v36 = vpack.c.bf16 %v815_v2, %v814_v50  ;;  %1355 = vrsqrt.f32 %v2396_v9  ;;  %v2763_v9 = vld [vmem:[#allocation42_spill] sm:$0xff] }
 0x1b8   : > { %v1340_v25 = vpop.eup %1339  ;;  %v1243_v22 = vpack.c.bf16 %v817_v55, %v816_v18 }
 0x1b9   : > { %v646_v49 = vmul.f32 %v1340_v25, %v2025_v51  ;;  %v647_v43 = vmul.f32 %v1340_v25, %v2028_v16  ;;  %v648_v62 = vmul.f32 %v1340_v25, %v2077_v1  ;;  %v649_v21 = vmul.f32 %v1340_v25, %v2098_v61  ;;  %1060 = vst [vmem:[%s2336_s7 + $0x50] sm:$0xff] %v1242_v36  ;;  %v2750_v1 = vld [vmem:[#allocation38_spill] sm:$0xff]  ;;  %v2752_v25 = vld [vmem:[#allocation35_spill] sm:$0xff] }
 0x1ba   : > { %v1342_v12 = vpop.eup %1341  ;;  %1061 = vst [vmem:[%s2336_s7 + $0x58] sm:$0xff] %v1243_v22  ;;  %1357 = vrsqrt.f32 %v2398_v8 }
 0x1bb   : > { %v1344_v30 = vpop.eup %1343  ;;  %v650_v0 = vmul.f32 %v1342_v12, %v2749_v15  ;;  %v651_v40 = vmul.f32 %v1342_v12, %v2020_v56  ;;  %v732_v57 = vmul.f32 %v2293_v14, %v646_v49  ;;  %v733_v5 = vmul.f32 %v2295_v59, %v647_v43 }
 0x1bc   : > { %v1346_v53 = vpop.eup %1345  ;;  %v734_v51 = vmul.f32 %v2297_v47, %v648_v62  ;;  %v735_v16 = vmul.f32 %v2299_v41, %v649_v21  ;;  %v652_v61 = vmul.f32 %v1342_v12, %v2750_v1  ;;  %v653_v45 = vmul.f32 %v1342_v12, %v2751_v38  ;;  %v2753_v12 = vld [vmem:[#allocation13_spill] sm:$0xff]  ;;  %v2754_v62 = vld [vmem:[#allocation15_spill] sm:$0xff] }
 0x1bd   : > { %v1348_v27 = vpop.eup %1347  ;;  %v736_v7 = vmul.f32 %v2293_v14, %v650_v0  ;;  %v737_v56 = vmul.f32 %v2295_v59, %v651_v40  ;;  %v818_v13 = vadd.f32 %v2301_v37, %v732_v57  ;;  %v819_v48 = vadd.f32 %v2303_v17, %v733_v5  ;;  %v2755_v40 = vld [vmem:[#allocation34_spill] sm:$0xff] }
 0x1be   : > { %v2420_v35 = vpop.eup %1349  ;;  %v820_v63 = vadd.f32 %v2305_v28, %v734_v51  ;;  %v821_v60 = vadd.f32 %v2307_v52, %v735_v16  ;;  %v738_v10 = vmul.f32 %v2297_v47, %v652_v61  ;;  %v739_v39 = vmul.f32 %v2299_v41, %v653_v45 }
 0x1bf   : > { %v822_v46 = vadd.f32 %v2301_v37, %v736_v7  ;;  %v823_v26 = vadd.f32 %v2303_v17, %v737_v56  ;;  %v2430_v44 = vpop.eup %1351  ;;  %v1244_v32 = vpack.c.bf16 %v819_v48, %v818_v13  ;;  %v654_v11 = vmul.f32 %v1344_v30, %v2058_v23  ;;  %v2756_v13 = vld [vmem:[#allocation36_spill] sm:$0xff] }
 0x1c0   : > { %v1245_v24 = vpack.c.bf16 %v821_v60, %v820_v63  ;;  %v655_v50 = vmul.f32 %v1344_v30, %v2752_v25  ;;  %v824_v2 = vadd.f32 %v2305_v28, %v738_v10  ;;  %v825_v18 = vadd.f32 %v2307_v52, %v739_v39  ;;  %v2437_v43 = vpop.eup %1353  ;;  %v2757_v60 = vld [vmem:[#allocation37_spill] sm:$0xff] }
 0x1c1   : > { %v1246_v55 = vpack.c.bf16 %v823_v26, %v822_v46  ;;  %v656_v49 = vmul.f32 %v1344_v30, %v2753_v12  ;;  %1062 = vst [vmem:[%s2336_s7 + $0x60] sm:$0xff] %v1244_v32  ;;  %v657_v21 = vmul.f32 %v1344_v30, %v2754_v62  ;;  %v740_v36 = vmul.f32 %v2293_v14, %v654_v11  ;;  %v2758_v26 = vld [vmem:[#allocation12_spill] sm:$0xff] }
 0x1c2   : > { %1063 = vst [vmem:[%s2336_s7 + $0x68] sm:$0xff] %v1245_v24  ;;  %v741_v23 = vmul.f32 %v2295_v59, %v655_v50  ;;  %v658_v22 = vmul.f32 %v1346_v53, %v2046_v29  ;;  %v1247_v15 = vpack.c.bf16 %v825_v18, %v824_v2  ;;  %v659_v57 = vmul.f32 %v1346_v53, %v2755_v40  ;;  %v2759_v24 = vld [vmem:[#allocation14_spill] sm:$0xff] }
 0x1c3   : > { %1064 = vst [vmem:[%s2336_s7 + $0x70] sm:$0xff] %v1246_v55  ;;  %v742_v0 = vmul.f32 %v2297_v47, %v656_v49  ;;  %v660_v5 = vmul.f32 %v1346_v53, %v2180_v34  ;;  %v743_v51 = vmul.f32 %v2299_v41, %v657_v21  ;;  %v826_v16 = vadd.f32 %v2301_v37, %v740_v36 }
 0x1c4   : > { %v827_v30 = vadd.f32 %v2303_v17, %v741_v23  ;;  %v661_v1 = vmul.f32 %v1346_v53, %v2184_v3  ;;  %1065 = vst [vmem:[%s2336_s7 + $0x78] sm:$0xff] %v1247_v15  ;;  %v744_v61 = vmul.f32 %v2293_v14, %v658_v22  ;;  %v745_v38 = vmul.f32 %v2295_v59, %v659_v57 }
 0x1c5   : > { %v828_v29 = vadd.f32 %v2305_v28, %v742_v0  ;;  %v746_v45 = vmul.f32 %v2297_v47, %v660_v5  ;;  %v829_v34 = vadd.f32 %v2307_v52, %v743_v51  ;;  %v662_v48 = vmul.f32 %v1348_v27, %v2756_v13  ;;  %v2761_v13 = vld [vmem:[#allocation17_spill] sm:$0xff] }
 0x1c6   : > { %v1248_v7 = vpack.c.bf16 %v827_v30, %v826_v16  ;;  %v747_v56 = vmul.f32 %v2299_v41, %v661_v1  ;;  %v830_v63 = vadd.f32 %v2301_v37, %v744_v61  ;;  %v831_v3 = vadd.f32 %v2303_v17, %v745_v38 }
 0x1c7   : > { %v832_v53 = vadd.f32 %v2305_v28, %v746_v45  ;;  %v663_v10 = vmul.f32 %v1348_v27, %v2757_v60  ;;  %v1249_v39 = vpack.c.bf16 %v829_v34, %v828_v29  ;;  %v664_v32 = vmul.f32 %v1348_v27, %v2758_v26 }
 0x1c8   : > { %1066 = vst [vmem:[%s2336_s7 + $0x80] sm:$0xff] %v1248_v7  ;;  %v833_v46 = vadd.f32 %v2307_v52, %v747_v56  ;;  %v665_v11 = vmul.f32 %v1348_v27, %v2759_v24  ;;  %v1250_v25 = vpack.c.bf16 %v831_v3, %v830_v63  ;;  %v748_v50 = vmul.f32 %v2293_v14, %v662_v48  ;;  %v2760_v56 = vld [vmem:[#allocation39_spill] sm:$0xff] }
 0x1c9   : > { %v749_v2 = vmul.f32 %v2295_v59, %v663_v10  ;;  %v666_v18 = vmul.f32 %v2420_v35, %v2081_v6  ;;  %1067 = vst [vmem:[%s2336_s7 + $0x88] sm:$0xff] %v1249_v39  ;;  %v750_v12 = vmul.f32 %v2297_v47, %v664_v32  ;;  %v667_v62 = vmul.f32 %v2420_v35, %v2085_v31  ;;  %v2762_v63 = vld [vmem:[#allocation19_spill] sm:$0xff] }
 0x1ca   : > { %v1251_v55 = vpack.c.bf16 %v833_v46, %v832_v53  ;;  %v751_v49 = vmul.f32 %v2299_v41, %v665_v11  ;;  %1068 = vst [vmem:[%s2336_s7 + $0x90] sm:$0xff] %v1250_v25  ;;  %v834_v27 = vadd.f32 %v2301_v37, %v748_v50  ;;  %v668_v36 = vmul.f32 %v2420_v35, %v2212_v19 }
 0x1cb   : > { %v835_v21 = vadd.f32 %v2303_v17, %v749_v2  ;;  %v669_v6 = vmul.f32 %v2420_v35, %v2216_v42  ;;  %v836_v23 = vadd.f32 %v2305_v28, %v750_v12  ;;  %v752_v31 = vmul.f32 %v2293_v14, %v666_v18  ;;  %v1356_v18 = vpop.eup %1355 }
 0x1cc   : > { %1069 = vst [vmem:[%s2336_s7 + $0x98] sm:$0xff] %v1251_v55  ;;  %v837_v22 = vadd.f32 %v2307_v52, %v751_v49  ;;  %v753_v15 = vmul.f32 %v2295_v59, %v667_v62  ;;  %v754_v40 = vmul.f32 %v2297_v47, %v668_v36  ;;  %v670_v19 = vmul.f32 %v2430_v44, %v2126_v4  ;;  %v1358_v55 = vpop.eup %1357  ;;  %v2764_v49 = vld [vmem:[#allocation22_spill] sm:$0xff] }
 0x1cd   : > { %v1252_v0 = vpack.c.bf16 %v835_v21, %v834_v27  ;;  %v755_v57 = vmul.f32 %v2299_v41, %v669_v6  ;;  %v838_v42 = vadd.f32 %v2301_v37, %v752_v31  ;;  %v671_v51 = vmul.f32 %v2430_v44, %v2130_v33  ;;  %v2765_v27 = vld [vmem:[#allocation16_spill] sm:$0xff]  ;;  %v2766_v21 = vld [vmem:[#allocation18_spill] sm:$0xff] }
 0x1ce   : > { %v1253_v5 = vpack.c.bf16 %v837_v22, %v836_v23  ;;  %v839_v35 = vadd.f32 %v2303_v17, %v753_v15  ;;  %v840_v16 = vadd.f32 %v2305_v28, %v754_v40  ;;  %v672_v1 = vmul.f32 %v2430_v44, %v2226_v58  ;;  %v2767_v6 = vld [vmem:[#allocation40_spill] sm:$0xff]  ;;  %v2768_v22 = vld [vmem:[#allocation41_spill] sm:$0xff] }
 0x1cf   : > { %1070 = vst [vmem:[%s2336_s7 + $0xa0] sm:$0xff] %v1252_v0  ;;  %v841_v30 = vadd.f32 %v2307_v52, %v755_v57  ;;  %v673_v4 = vmul.f32 %v2430_v44, %v2232_v20  ;;  %v756_v61 = vmul.f32 %v2293_v14, %v670_v19  ;;  %v757_v38 = vmul.f32 %v2295_v59, %v671_v51  ;;  %v2769_v15 = vld [vmem:[#allocation21_spill] sm:$0xff]  ;;  %v2770_v40 = vld [vmem:[#allocation20_spill] sm:$0xff] }
 0x1d0   : > { %1071 = vst [vmem:[%s2336_s7 + $0xa8] sm:$0xff] %v1253_v5  ;;  %v1254_v29 = vpack.c.bf16 %v839_v35, %v838_v42  ;;  %v674_v33 = vmul.f32 %v2437_v43, %v2118_v54  ;;  %v758_v34 = vmul.f32 %v2297_v47, %v672_v1  ;;  %v675_v58 = vmul.f32 %v2437_v43, %v2760_v56 }
 0x1d1   : > { %v1255_v45 = vpack.c.bf16 %v841_v30, %v840_v16  ;;  %v759_v7 = vmul.f32 %v2299_v41, %v673_v4  ;;  %v842_v20 = vadd.f32 %v2301_v37, %v756_v61  ;;  %v843_v44 = vadd.f32 %v2303_v17, %v757_v38 }
 0x1d2   : > { %1072 = vst [vmem:[%s2336_s7 + $0xb0] sm:$0xff] %v1254_v29  ;;  %v676_v48 = vmul.f32 %v2437_v43, %v2761_v13  ;;  %v677_v54 = vmul.f32 %v2437_v43, %v2762_v63  ;;  %v844_v3 = vadd.f32 %v2305_v28, %v758_v34  ;;  %v760_v60 = vmul.f32 %v2293_v14, %v674_v33 }
 0x1d3   : > { %1073 = vst [vmem:[%s2336_s7 + $0xb8] sm:$0xff] %v1255_v45  ;;  %v845_v53 = vadd.f32 %v2307_v52, %v759_v7  ;;  %v761_v10 = vmul.f32 %v2295_v59, %v675_v58  ;;  %v1256_v39 = vpack.c.bf16 %v843_v44, %v842_v20  ;;  %v678_v12 = vmul.f32 %v1356_v18, %v2763_v9 }
 0x1d4   : > { %v762_v46 = vmul.f32 %v2297_v47, %v676_v48  ;;  %v763_v26 = vmul.f32 %v2299_v41, %v677_v54  ;;  %v846_v32 = vadd.f32 %v2301_v37, %v760_v60  ;;  %v679_v62 = vmul.f32 %v1356_v18, %v2764_v49 }
 0x1d5   : > { %v1257_v43 = vpack.c.bf16 %v845_v53, %v844_v3  ;;  %v847_v24 = vadd.f32 %v2303_v17, %v761_v10  ;;  %1074 = vst [vmem:[%s2336_s7 + $0xc0] sm:$0xff] %v1256_v39  ;;  %v680_v8 = vmul.f32 %v1356_v18, %v2765_v27  ;;  %v681_v36 = vmul.f32 %v1356_v18, %v2766_v21 }
 0x1d6   : > { %v848_v11 = vadd.f32 %v2305_v28, %v762_v46  ;;  %v849_v25 = vadd.f32 %v2307_v52, %v763_v26  ;;  %v682_v23 = vmul.f32 %v1358_v55, %v2767_v6  ;;  %v683_v31 = vmul.f32 %v1358_v55, %v2768_v22 }
 0x1d7   : > { %1075 = vst [vmem:[%s2336_s7 + $0xc8] sm:$0xff] %v1257_v43  ;;  %v1258_v50 = vpack.c.bf16 %v847_v24, %v846_v32  ;;  %v684_v0 = vmul.f32 %v1358_v55, %v2769_v15  ;;  %v685_v57 = vmul.f32 %v1358_v55, %v2770_v40  ;;  %v764_v19 = vmul.f32 %v2293_v14, %v678_v12 }
 0x1d8   : > { %v1259_v2 = vpack.c.bf16 %v849_v25, %v848_v11  ;;  %v765_v5 = vmul.f32 %v2295_v59, %v679_v62  ;;  %v766_v42 = vmul.f32 %v2297_v47, %v680_v8  ;;  %v767_v35 = vmul.f32 %v2299_v41, %v681_v36 }
 0x1d9   : > { %1076 = vst [vmem:[%s2336_s7 + $0xd0] sm:$0xff] %v1258_v50  ;;  %v768_v51 = vmul.f32 %v2293_v14, %v682_v23  ;;  %v769_v16 = vmul.f32 %v2295_v59, %v683_v31  ;;  %v770_v30 = vmul.f32 %v2297_v47, %v684_v0  ;;  %v771_v1 = vmul.f32 %v2299_v41, %v685_v57 }
 0x1da   : > { %1077 = vst [vmem:[%s2336_s7 + $0xd8] sm:$0xff] %v1259_v2  ;;  %v850_v4 = vadd.f32 %v2301_v37, %v764_v19  ;;  %v851_v29 = vadd.f32 %v2303_v17, %v765_v5  ;;  %v852_v61 = vadd.f32 %v2305_v28, %v766_v42  ;;  %v853_v14 = vadd.f32 %v2307_v52, %v767_v35 }
 0x1db   : > { %v854_v59 = vadd.f32 %v2301_v37, %v768_v51  ;;  %v855_v47 = vadd.f32 %v2303_v17, %v769_v16  ;;  %v856_v41 = vadd.f32 %v2305_v28, %v770_v30  ;;  %v857_v38 = vadd.f32 %v2307_v52, %v771_v1 }
 0x1dc   : > { %v1260_v33 = vpack.c.bf16 %v851_v29, %v850_v4  ;;  %v1261_v45 = vpack.c.bf16 %v853_v14, %v852_v61 }
 0x1dd   : > { %v1262_v37 = vpack.c.bf16 %v855_v47, %v854_v59  ;;  %v1263_v34 = vpack.c.bf16 %v857_v38, %v856_v41 }
 0x1de   : > { %1078 = vst [vmem:[%s2336_s7 + $0xe0] sm:$0xff] %v1260_v33  ;;  %1079 = vst [vmem:[%s2336_s7 + $0xe8] sm:$0xff] %v1261_v45 }
 0x1df   : > { %1080 = vst [vmem:[%s2336_s7 + $0xf0] sm:$0xff] %v1262_v37  ;;  %1081 = vst [vmem:[%s2336_s7 + $0xf8] sm:$0xff] %v1263_v34 }
 0x1e0   : > { %1430 = shalt.err (!%p1427_p13)
}
 0x1e1   : > { %s1431_s9 = scalar_lea.hbm %s2567_s20, 4096  ;;  %s1435_s17 = scalar_lea.hbm %s2620_s3, 8192 }
 0x1e2   : > { %p1432_p7 = scmp.ne.s32.totalorder %s2567_s20, %s1431_s9  ;;  %p1436_p1 = scmp.lt.u32.totalorder %s2567_s20, %s2620_s3 }
 0x1e3   : > { %p1437_p11 = scmp.lt.u32.totalorder %s1435_s17, %s1431_s9  ;;  %p1439_p9 = scmp.lt.u32.totalorder %s1431_s9, %s2567_s20 }
 0x1e4   : > { %p1433_p3 = pnand %p1432_p7, %p2771_p10 }
 0x1e5   : > { %p1438_p8 = por %p1437_p11, %p1436_p1 }
 0x1e6   : > { %p1434_p12 = pneg %p1433_p3 }
 0x1e7   : > { %p1440_p2 = por %p1439_p9, %p1438_p8 }
 0x1e9   : > { %p1441_p4 = pnand %p1440_p2, %p1434_p12 }
 0x1eb   : > { %1444 = shalt.err (!%p1441_p4)
}
 0x1ec   : > { %s1494_s4 = smov 256   ;;  %s1495_s7 = smov 16  }
 0x1ed   : > { %1272 = dma.vmem_to_hbm [thread:$0]  (%p2771_p10), %s2569_s29, 4096, %s2567_s20, %s1083_s30, %s1494_s4, %s1494_s4, %s1495_s7  }
 0x1ee PF: > { %s1112_s10 = sand.u32 1, %s1475_s12   ;;  %p2772_p5 = scmp.ne.s32.totalorder %s2673_s25, 0 }
 0x1ef   : > { %p2773_p0 = scmp.ge.s32.totalorder %s1487_s15, 2  ;;  %s1113_s16 = scalar_lea.sflag [#allocation4], %s1112_s10 }
 0x1f1   : > { %p1283_p6 = pnand %p2773_p0, %p2772_p5 }
 0x1f3   : > { %1470 = dma.done.wait (!%p1283_p6), %s1113_s16, 4096  }
 0x1f4   : > { %1472 = vsyncadd (!%p1283_p6), %s1113_s16, 4294963200  ;;  %p17_p13 = scmp.ge.s32.totalorder %s1541_s18, 4   ;;  %s2774_s12 = smov %s1479_s13 }
 0x1f5   : > { %s2775_s13 = smov %s1483_s14  ;;  %s2776_s14 = smov %s1553_s21 }
 0x1f6   : > { %s2777_s15 = smov %s1541_s18  ;;  %19 = sbr.rel (!%p17_p13) target bundleno = 6 (0x6), region = 81 }
 0x1fd   :  { %1118 = vsyncpa [#allocation3], 1 }
 0x1fe   :  { %1120 = vsyncpa [#allocation3 + $0x1], 1 }
 0x1ff   :  { %1121 = vsyncpa [#allocation6], 1 }
 0x200   :  { %1122 = vsyncpa [#allocation4], 1 }
 0x201   :  { %1124 = vsyncpa [#allocation4 + $0x1], 1 }

</bundles_post_ra>
